<compile_context>
chip_gen: v7x
topology: tpu7x:2x2x1
jax: 0.10.0
libtpu: 0.0.40
codegen_flags: <defaults>
</compile_context>

<pallas_src>
import functools

import jax
import jax.numpy as jnp
from jax.experimental import pallas as pl
from jax.experimental.pallas import tpu as pltpu

_NS = 10  # number of per-tile scalar partial sums


# ----------------------------------------------------------------------------
# helpers (used both in-kernel and in the reference)
# ----------------------------------------------------------------------------
def _softplus(x):
    # stable softplus;  -log(sigmoid(x)) = softplus(x) - x,  -log(1-sigmoid(x)) = softplus(x)
    return jnp.maximum(x, 0.0) + jnp.log1p(jnp.exp(-jnp.abs(x)))


def _smooth_l1(diff):
    ad = jnp.abs(diff)
    return jnp.where(ad < 1.0, 0.5 * diff * diff, ad - 0.5)


# ----------------------------------------------------------------------------
# map kernel: all dense per-pixel losses + per-(n, chunk) scalar partials
# ----------------------------------------------------------------------------
def _make_kernel(TH, W, Wp, H, HTC, ragged):
    f32 = jnp.float32

    def masked(term, m):
        # term * m, but NaN/Inf in `term` is suppressed wherever m == 0
        # (needed for the ragged-H padding rows whose input data is undefined).
        return jnp.where(m > 0.0, term, 0.0) * m

    def kernel(pred_ref, gtx_ref, gcr_ref, gm_ref, gtp_ref, gbt_ref,
               gsn_ref, gcs_ref, neg_ref, scal_ref):
        c_id = pl.program_id(1)
        h_id = pl.program_id(2)

        # pred block (1, 6, TH, W): slice channels in VMEM, cast to f32 in-kernel.
        pt = pred_ref[0, 0, :, :].astype(f32)    # text-region logits
        pc = pred_ref[0, 1, :, :].astype(f32)    # center-region logits
        ps = pred_ref[0, 2, :, :].astype(f32)    # sin
        pco = pred_ref[0, 3, :, :].astype(f32)   # cos
        ptp = pred_ref[0, 4, :, :].astype(f32)   # top height
        pbt = pred_ref[0, 5, :, :].astype(f32)   # bottom height

        gt_text = gtx_ref[0, :, :].astype(f32)
        gt_center = gcr_ref[0, :, :].astype(f32)
        gt_mask = gm_ref[0, :, :].astype(f32)
        gt_top = gtp_ref[0, :, :].astype(f32)
        gt_bot = gbt_ref[0, :, :].astype(f32)
        gt_sin = gsn_ref[0, :, :].astype(f32)
        gt_cos = gcs_ref[0, :, :].astype(f32)

        if ragged:
            # rows past the true H come from an undefined edge-block pad: kill
            # them through the mask (all partials are gated by gt_mask below).
            row0 = (c_id * HTC + h_id) * TH
            rows = jax.lax.broadcasted_iota(jnp.int32, (TH, W), 0) + row0
            gt_mask = jnp.where(rows < H, gt_mask, 0.0)

        positive = masked(gt_text, gt_mask)            # gt_text * gt_mask
        negative = gt_mask - positive                  # (1 - gt_text) * gt_mask
        center_mask = masked(gt_center, gt_mask)

        # normalise predicted sin/cos (single EUP rsqrt)
        scale = jax.lax.rsqrt(ps * ps + pco * pco + 1e-8)
        psn = ps * scale
        pcn = pco * scale

        # BCE from logits.  torch F.binary_cross_entropy clamps each log term
        # at -100; reproduced with min(softplus, 100).
        sp_t = _softplus(pt)
        bce_text = (gt_text * jnp.minimum(sp_t - pt, 100.0)
                    + (1.0 - gt_text) * jnp.minimum(sp_t, 100.0))
        sp_c = _softplus(pc)
        bce_center = (gt_center * jnp.minimum(sp_c - pc, 100.0)
                      + (1.0 - gt_center) * jnp.minimum(sp_c, 100.0))

        # OHEM candidate map (lane-dense: pad W up to a multiple of 128 with 0s)
        neg_loss = masked(bce_text, negative)
        if Wp > W:
            neg_out = jnp.concatenate(
                [neg_loss, jnp.zeros((TH, Wp - W), f32)], axis=1)
        else:
            neg_out = neg_loss
        neg_ref[0, :, :] = neg_out

        loss_top = _smooth_l1(ptp / (gt_top + 0.01) - 1.0)
        loss_bot = _smooth_l1(pbt / (gt_bot + 0.01) - 1.0)
        height_term = jnp.log(gt_top + gt_bot + 1.0) * (loss_top + loss_bot)

        quantities = (
            positive,                                       # 0 pos pixel count
            negative,                                       # 1 neg pixel count
            masked(bce_text, positive),                     # 2 positive text BCE
            masked(bce_center, positive),                   # 3 center BCE on text px
            masked(bce_center, negative),                   # 4 center BCE on non-text px
            center_mask,                                    # 5 center pixel count
            masked(height_term, center_mask),               # 6 height numerator
            masked(_smooth_l1(psn - gt_sin), center_mask),  # 7 sin numerator
            masked(_smooth_l1(pcn - gt_cos), center_mask),  # 8 cos numerator
            neg_loss,                                       # 9 sum of all OHEM candidates
        )
        # one (NS, W) partial per tile (sublane reductions ride the XLU slot),
        # single vector add into the resident per-(n, c) output block.
        vals = jnp.concatenate(
            [jnp.sum(q, axis=0, keepdims=True) for q in quantities], axis=0)

        @pl.when(h_id == 0)
        def _():
            scal_ref[0, 0, :, :] = vals

        @pl.when(h_id != 0)
        def _():
            scal_ref[0, 0, :, :] = scal_ref[0, 0, :, :] + vals

    return kernel


# ----------------------------------------------------------------------------
# tile-size selection (multiple of 8 rows or the full H; never whole huge maps)
# ----------------------------------------------------------------------------
def _pick_tile_rows(H, W, target_elems=128 * 1024):
    max_rows = (target_elems // max(W, 1)) // 8 * 8
    max_rows = max(8, min(max_rows, 512))
    if H <= max_rows:
        return H
    divs = [d for d in range(8, max_rows + 1, 8) if H % d == 0]
    return max(divs) if divs else max_rows      # ragged last tile handled in-kernel


# ----------------------------------------------------------------------------
# OHEM: sum of the k largest entries of a non-negative f32 vector (dynamic k)
# ----------------------------------------------------------------------------
_OHEM_PASSES = ((28, 3), (24, 4), (20, 4), (16, 4), (12, 4), (8, 4))


def _ohem_topk_sum(values, k):
    """6-pass MSD radix-select on the f32 bit pattern + 1 fused threshold pass.

    The k-th value is located to its top-(8 exp + 15 mantissa)-bit bucket, so
    the result is exact unless distinct values collide in those bits; the
    relative error is bounded by 2^-15.  Each pass extracts a small digit per
    element and fuses the 15 digit-compares into the reduction (no candidate
    thresholds at full width are ever broadcast against the data).
    """
    k = k.astype(jnp.int32)
    u = jax.lax.bitcast_convert_type(values, jnp.int32)   # monotone for x >= 0
    prefix = jnp.int32(0)
    for base, width in _OHEM_PASSES:
        ndig = (1 << width) - 1
        d = jnp.clip((u - prefix) >> base, 0, ndig)        # per-element digit
        thr = jnp.arange(1, ndig + 1, dtype=jnp.int32)
        counts = jnp.sum(d[None, :] >= thr[:, None], axis=1)   # (ndig,)
        digit = jnp.sum((counts >= k).astype(jnp.int32))
        prefix = prefix + (digit << base)
    lower = jax.lax.bitcast_convert_type(prefix, jnp.float32)  # bucket lower bound
    ge_upper = u >= (prefix + (1 << _OHEM_PASSES[-1][0]))
    count_above = jnp.sum(ge_upper.astype(jnp.float32))
    sum_above = jnp.sum(jnp.where(ge_upper, values, 0.0))
    r = jnp.maximum(k.astype(jnp.float32) - count_above, 0.0)
    return sum_above + r * lower


# ----------------------------------------------------------------------------
# wrapper
# ----------------------------------------------------------------------------
def drrg_loss(pred_maps, gcn_pred, gt_labels,
              gt_text_mask, gt_center_region_mask, gt_mask,
              gt_top_height_map, gt_bot_height_map, gt_sin_map, gt_cos_map,
              downsample_ratio=1.0, ohem_ratio=3.0, tile_rows=None,
              target_tile_elems=128 * 1024, vmem_limit_bytes=40 * 1024 * 1024):
    # Inputs keep their native dtype (bf16 / uint8 / f32); cast happens in-kernel.
    assert abs(downsample_ratio - 1.0) < 0.01
    N, C6, H, W = pred_maps.shape
    assert C6 == 6
    f32 = jnp.float32

    TH = min(tile_rows, H) if tile_rows is not None else _pick_tile_rows(
        H, W, target_tile_elems)
    assert TH == H or TH % 8 == 0, (H, TH)
    HT = -(-H // TH)                      # ceil-div (ragged last tile is masked)
    ragged = (H % TH) != 0
    C = 2 if HT % 2 == 0 else 1           # second parallel axis for v7x megacore
    HTC = HT // C
    Wp = -(-W // 128) * 128               # lane-dense neg-loss map width

    kernel = _make_kernel(TH, W, Wp, H, HTC, ragged)

    pred_spec = pl.BlockSpec((1, 6, TH, W), lambda n, c, h: (n, 0, c * HTC + h, 0))
    gt_spec = pl.BlockSpec((1, TH, W), lambda n, c, h: (n, c * HTC + h, 0))
    neg_spec = pl.BlockSpec((1, TH, Wp), lambda n, c, h: (n, c * HTC + h, 0))
    scal_spec = pl.BlockSpec((1, 1, _NS, W), lambda n, c, h: (n, c, 0, 0))

    neg_loss_map, scal = pl.pallas_call(
        kernel,
        grid=(N, C, HTC),
        out_shape=(jax.ShapeDtypeStruct((N, H, Wp), f32),
                   jax.ShapeDtypeStruct((N, C, _NS, W), f32)),
        in_specs=[pred_spec] + [gt_spec] * 7,
        out_specs=(neg_spec, scal_spec),
        compiler_params=pltpu.CompilerParams(
            dimension_semantics=("parallel", "parallel", "arbitrary"),
            vmem_limit_bytes=vmem_limit_bytes),
    )(pred_maps, gt_text_mask, gt_center_region_mask, gt_mask,
      gt_top_height_map, gt_bot_height_map, gt_sin_map, gt_cos_map)

    totals = jnp.sum(scal, axis=(0, 1, 3))            # (_NS,)
    pos_count, neg_total, pos_loss = totals[0], totals[1], totals[2]
    center_pos, center_neg, center_sum = totals[3], totals[4], totals[5]
    height_num, sin_num, cos_num = totals[6], totals[7], totals[8]
    neg_loss_sum = totals[9]

    pos_count_i = jnp.round(pos_count).astype(jnp.int32)
    neg_total_i = jnp.round(neg_total).astype(jnp.int32)

    # ---- balanced BCE with OHEM ----
    neg_count = jnp.where(
        pos_count_i > 0,
        jnp.minimum(neg_total_i,
                    jnp.floor(pos_count * ohem_ratio).astype(jnp.int32)),
        jnp.int32(100))
    neg_flat = neg_loss_map.reshape(-1)
    topk_sum = jax.lax.cond(
        neg_count >= neg_total_i,
        lambda: neg_loss_sum,                         # OHEM keeps every negative: free
        lambda: _ohem_topk_sum(neg_flat, neg_count))  # clipped: bounded radix-select
    loss_text = (pos_loss + topk_sum) / (
        (pos_count_i + neg_count).astype(f32) + 1e-5)

    # ---- center-region loss ----
    loss_center_pos = jnp.where(pos_count > 0.5, center_pos / pos_count, 0.0)
    # NOTE: the torch reference divides unconditionally (NaN when there is no
    # negative-text pixel); the degenerate case is guarded here.
    loss_center_neg = jnp.where(neg_total > 0.5, center_neg / neg_total, 0.0)
    loss_center = loss_center_pos + 0.5 * loss_center_neg

    # ---- height / sin / cos regression ----
    has_center = center_sum > 0.5
    loss_height = jnp.where(has_center, height_num / center_sum, 0.0)
    loss_sin = jnp.where(has_center, sin_num / center_sum, 0.0)
    loss_cos = jnp.where(has_center, cos_num / center_sum, 0.0)

    # ---- GCN cross-entropy: (M, 2) logits are tiny -> plain JAX ----
    labels = gt_labels.reshape(-1).astype(jnp.int32)
    logits = gcn_pred.astype(f32)
    logz = jax.nn.logsumexp(logits, axis=-1)
    picked = jnp.take_along_axis(logits, labels[:, None], axis=-1)[:, 0]
    loss_gcn = jnp.mean(logz - picked)

    return dict(loss_text=loss_text, loss_center=loss_center,
                loss_height=loss_height, loss_sin=loss_sin,
                loss_cos=loss_cos, loss_gcn=loss_gcn)


# ----------------------------------------------------------------------------
# pure-JAX reference (direct translation of the torch math) for validation
# ----------------------------------------------------------------------------
def _reference_drrg_loss(pred_maps, gcn_pred, gt_labels,
                         gt_text, gt_center, gt_mask,
                         gt_top, gt_bot, gt_sin, gt_cos, ohem_ratio=3.0):
    f32 = jnp.float32
    pred_maps = pred_maps.astype(f32)
    gt_text, gt_center, gt_mask, gt_top, gt_bot, gt_sin, gt_cos = (
        x.astype(f32) for x in (gt_text, gt_center, gt_mask, gt_top, gt_bot,
                                gt_sin, gt_cos))
    pt, pc = pred_maps[:, 0], pred_maps[:, 1]
    ps, pco = pred_maps[:, 2], pred_maps[:, 3]
    ptp, pbt = pred_maps[:, 4], pred_maps[:, 5]
    scale = jnp.sqrt(1.0 / (ps ** 2 + pco ** 2 + 1e-8))
    ps, pco = ps * scale, pco * scale

    def bce(p, g):
        return -(g * jnp.maximum(jnp.log(p), -100.0)
                 + (1.0 - g) * jnp.maximum(jnp.log(1.0 - p), -100.0))

    positive = gt_text * gt_mask
    negative = (1.0 - gt_text) * gt_mask
    pos_count = jnp.floor(jnp.sum(positive)).astype(jnp.int32)
    loss = bce(jax.nn.sigmoid(pt), gt_text)
    pos_loss = jnp.sum(loss * positive)
    neg_loss = loss * negative
    neg_count = jnp.where(
        pos_count > 0,
        jnp.minimum(jnp.floor(jnp.sum(negative)).astype(jnp.int32),
                    jnp.floor(pos_count.astype(f32) * ohem_ratio).astype(jnp.int32)),
        jnp.int32(100))
    flat = neg_loss.reshape(-1)
    sorted_desc = jnp.sort(flat)[::-1]
    csum = jnp.cumsum(sorted_desc)
    topk = jnp.where(neg_count > 0,
                     csum[jnp.clip(neg_count - 1, 0, flat.size - 1)], 0.0)
    loss_text = (pos_loss + topk) / ((pos_count + neg_count).astype(f32) + 1e-5)

    loss_center_map = bce(jax.nn.sigmoid(pc), gt_center)
    lcp = jnp.where(jnp.sum(positive) > 0.5,
                    jnp.sum(loss_center_map * positive) / jnp.sum(positive), 0.0)
    lcn = jnp.where(jnp.sum(negative) > 0.5,
                    jnp.sum(loss_center_map * negative) / jnp.sum(negative), 0.0)
    loss_center = lcp + 0.5 * lcn

    center_mask = gt_center * gt_mask
    cs = jnp.sum(center_mask)
    lt = _smooth_l1(ptp / (gt_top + 0.01) - 1.0)
    lb = _smooth_l1(pbt / (gt_bot + 0.01) - 1.0)
    loss_height = jnp.where(
        cs > 0.5,
        jnp.sum(jnp.log(gt_top + gt_bot + 1.0) * (lt + lb) * center_mask) / cs, 0.0)
    loss_sin = jnp.where(cs > 0.5, jnp.sum(_smooth_l1(ps - gt_sin) * center_mask) / cs, 0.0)
    loss_cos = jnp.where(cs > 0.5, jnp.sum(_smooth_l1(pco - gt_cos) * center_mask) / cs, 0.0)

    labels = gt_labels.reshape(-1).astype(jnp.int32)
    logits = gcn_pred.astype(f32)
    logz = jax.nn.logsumexp(logits, axis=-1)
    picked = jnp.take_along_axis(logits, labels[:, None], axis=-1)[:, 0]
    loss_gcn = jnp.mean(logz - picked)

    return dict(loss_text=loss_text, loss_center=loss_center,
                loss_height=loss_height, loss_sin=loss_sin,
                loss_cos=loss_cos, loss_gcn=loss_gcn)


# ----------------------------------------------------------------------------
if __name__ == "__main__":
    N, H, W, M = 2, 32, 32, 8
    run = jax.jit(functools.partial(drrg_loss, downsample_ratio=1.0,
                                    ohem_ratio=3.0, tile_rows=8))

    def make_case(key, p_text):
        ks = jax.random.split(key, 9)
        pred_maps = jax.random.normal(ks[0], (N, 6, H, W), jnp.float32).astype(jnp.bfloat16)
        gt_text = (jax.random.uniform(ks[1], (N, H, W)) < p_text).astype(jnp.bfloat16)
        gt_center = gt_text * (jax.random.uniform(ks[2], (N, H, W)) < 0.5).astype(jnp.bfloat16)
        gt_mask = (jax.random.uniform(ks[3], (N, H, W)) < 0.9).astype(jnp.bfloat16)
        gt_top = jax.random.uniform(ks[4], (N, H, W), minval=1.0, maxval=10.0).astype(jnp.bfloat16)
        gt_bot = jax.random.uniform(ks[5], (N, H, W), minval=1.0, maxval=10.0).astype(jnp.bfloat16)
        theta = jax.random.uniform(ks[6], (N, H, W), maxval=2.0 * jnp.pi)
        gt_sin = jnp.sin(theta).astype(jnp.bfloat16)
        gt_cos = jnp.cos(theta).astype(jnp.bfloat16)
        gcn_pred = jax.random.normal(ks[7], (M, 2), jnp.float32)
        gt_labels = jax.random.randint(ks[8], (M // 2, 2), 0, 2, jnp.int32)
        return (pred_maps, gcn_pred, gt_labels, gt_text, gt_center, gt_mask,
                gt_top, gt_bot, gt_sin, gt_cos)

    # tile_rows=8 -> grid (2, 2, 2): exercises both parallel axes and the
    # resident-accumulator h axis.  The three cases cover: OHEM no-clip
    # shortcut (dense text), OHEM clip -> radix-select path (sparse text),
    # and the pos_count == 0 -> k = 100 path.
    case_keys = jax.random.split(jax.random.PRNGKey(0), 3)
    cases = [make_case(case_keys[0], 0.5),
             make_case(case_keys[1], 0.1),
             make_case(case_keys[2], 0.0)]

    for idx, args in enumerate(cases):
        losses = run(*args)
        losses = {k: jax.block_until_ready(v) for k, v in losses.items()}
        ref = _reference_drrg_loss(*args, ohem_ratio=3.0)
        for name in losses:
            got = float(losses[name])
            want = float(ref[name])
            assert bool(jnp.isfinite(losses[name])), (idx, name, got)
            assert abs(got - want) <= 1e-3 + 1e-3 * abs(want), (idx, name, got, want)

    print("KERNEL_OK")
</pallas_src>

<mosaic_0001>
module attributes {stable_mosaic.version = 11 : i64} {
  func.func @kernel(%arg0: i32, %arg1: i32, %arg2: i32, %arg3: memref<1x6x8x32xbf16, #tpu.memory_space<vmem>>, %arg4: memref<1x8x32xbf16, #tpu.memory_space<vmem>>, %arg5: memref<1x8x32xbf16, #tpu.memory_space<vmem>>, %arg6: memref<1x8x32xbf16, #tpu.memory_space<vmem>>, %arg7: memref<1x8x32xbf16, #tpu.memory_space<vmem>>, %arg8: memref<1x8x32xbf16, #tpu.memory_space<vmem>>, %arg9: memref<1x8x32xbf16, #tpu.memory_space<vmem>>, %arg10: memref<1x8x32xbf16, #tpu.memory_space<vmem>>, %arg11: memref<1x8x128xf32, #tpu.memory_space<vmem>>, %arg12: memref<1x1x10x32xf32, #tpu.memory_space<vmem>>) attributes {dimension_semantics = [#tpu.dimension_semantics<parallel>, #tpu.dimension_semantics<parallel>, #tpu.dimension_semantics<arbitrary>], iteration_bounds = array<i64: 2, 2, 2>, scalar_prefetch = 0 : i64, scratch_operands = 0 : i64, tpu.core_type = #tpu.core_type<tc>, window_params = [{transform_indices = @transform_0, window_bounds = array<i64: 1, 6, 8, 32>}, {transform_indices = @transform_1, window_bounds = array<i64: 1, 8, 32>}, {transform_indices = @transform_2, window_bounds = array<i64: 1, 8, 32>}, {transform_indices = @transform_3, window_bounds = array<i64: 1, 8, 32>}, {transform_indices = @transform_4, window_bounds = array<i64: 1, 8, 32>}, {transform_indices = @transform_5, window_bounds = array<i64: 1, 8, 32>}, {transform_indices = @transform_6, window_bounds = array<i64: 1, 8, 32>}, {transform_indices = @transform_7, window_bounds = array<i64: 1, 8, 32>}, {transform_indices = @transform_8, window_bounds = array<i64: 1, 8, 128>}, {transform_indices = @transform_9, window_bounds = array<i64: 1, 1, 10, 32>}]} {
    %c0 = arith.constant 0 : index
    %c0_0 = arith.constant 0 : index
    %c0_1 = arith.constant 0 : index
    %c0_2 = arith.constant 0 : index
    %0 = vector.load %arg3[%c0, %c0_0, %c0_1, %c0_2] : memref<1x6x8x32xbf16, #tpu.memory_space<vmem>>, vector<1x1x8x32xbf16>
    %1 = vector.shape_cast %0 : vector<1x1x8x32xbf16> to vector<8x32xbf16>
    %2 = arith.extf %1 : vector<8x32xbf16> to vector<8x32xf32>
    %c0_3 = arith.constant 0 : index
    %c1 = arith.constant 1 : index
    %c0_4 = arith.constant 0 : index
    %c0_5 = arith.constant 0 : index
    %3 = vector.load %arg3[%c0_3, %c1, %c0_4, %c0_5] : memref<1x6x8x32xbf16, #tpu.memory_space<vmem>>, vector<1x1x8x32xbf16>
    %4 = vector.shape_cast %3 : vector<1x1x8x32xbf16> to vector<8x32xbf16>
    %5 = arith.extf %4 : vector<8x32xbf16> to vector<8x32xf32>
    %c0_6 = arith.constant 0 : index
    %c2 = arith.constant 2 : index
    %c0_7 = arith.constant 0 : index
    %c0_8 = arith.constant 0 : index
    %6 = vector.load %arg3[%c0_6, %c2, %c0_7, %c0_8] : memref<1x6x8x32xbf16, #tpu.memory_space<vmem>>, vector<1x1x8x32xbf16>
    %7 = vector.shape_cast %6 : vector<1x1x8x32xbf16> to vector<8x32xbf16>
    %8 = arith.extf %7 : vector<8x32xbf16> to vector<8x32xf32>
    %c0_9 = arith.constant 0 : index
    %c3 = arith.constant 3 : index
    %c0_10 = arith.constant 0 : index
    %c0_11 = arith.constant 0 : index
    %9 = vector.load %arg3[%c0_9, %c3, %c0_10, %c0_11] : memref<1x6x8x32xbf16, #tpu.memory_space<vmem>>, vector<1x1x8x32xbf16>
    %10 = vector.shape_cast %9 : vector<1x1x8x32xbf16> to vector<8x32xbf16>
    %11 = arith.extf %10 : vector<8x32xbf16> to vector<8x32xf32>
    %c0_12 = arith.constant 0 : index
    %c4 = arith.constant 4 : index
    %c0_13 = arith.constant 0 : index
    %c0_14 = arith.constant 0 : index
    %12 = vector.load %arg3[%c0_12, %c4, %c0_13, %c0_14] : memref<1x6x8x32xbf16, #tpu.memory_space<vmem>>, vector<1x1x8x32xbf16>
    %13 = vector.shape_cast %12 : vector<1x1x8x32xbf16> to vector<8x32xbf16>
    %14 = arith.extf %13 : vector<8x32xbf16> to vector<8x32xf32>
    %c0_15 = arith.constant 0 : index
    %c5 = arith.constant 5 : index
    %c0_16 = arith.constant 0 : index
    %c0_17 = arith.constant 0 : index
    %15 = vector.load %arg3[%c0_15, %c5, %c0_16, %c0_17] : memref<1x6x8x32xbf16, #tpu.memory_space<vmem>>, vector<1x1x8x32xbf16>
    %16 = vector.shape_cast %15 : vector<1x1x8x32xbf16> to vector<8x32xbf16>
    %17 = arith.extf %16 : vector<8x32xbf16> to vector<8x32xf32>
    %c0_18 = arith.constant 0 : index
    %c0_19 = arith.constant 0 : index
    %c0_20 = arith.constant 0 : index
    %18 = vector.load %arg4[%c0_18, %c0_19, %c0_20] : memref<1x8x32xbf16, #tpu.memory_space<vmem>>, vector<1x8x32xbf16>
    %19 = vector.shape_cast %18 : vector<1x8x32xbf16> to vector<8x32xbf16>
    %20 = arith.extf %19 : vector<8x32xbf16> to vector<8x32xf32>
    %c0_21 = arith.constant 0 : index
    %c0_22 = arith.constant 0 : index
    %c0_23 = arith.constant 0 : index
    %21 = vector.load %arg5[%c0_21, %c0_22, %c0_23] : memref<1x8x32xbf16, #tpu.memory_space<vmem>>, vector<1x8x32xbf16>
    %22 = vector.shape_cast %21 : vector<1x8x32xbf16> to vector<8x32xbf16>
    %23 = arith.extf %22 : vector<8x32xbf16> to vector<8x32xf32>
    %c0_24 = arith.constant 0 : index
    %c0_25 = arith.constant 0 : index
    %c0_26 = arith.constant 0 : index
    %24 = vector.load %arg6[%c0_24, %c0_25, %c0_26] : memref<1x8x32xbf16, #tpu.memory_space<vmem>>, vector<1x8x32xbf16>
    %25 = vector.shape_cast %24 : vector<1x8x32xbf16> to vector<8x32xbf16>
    %26 = arith.extf %25 : vector<8x32xbf16> to vector<8x32xf32>
    %c0_27 = arith.constant 0 : index
    %c0_28 = arith.constant 0 : index
    %c0_29 = arith.constant 0 : index
    %27 = vector.load %arg7[%c0_27, %c0_28, %c0_29] : memref<1x8x32xbf16, #tpu.memory_space<vmem>>, vector<1x8x32xbf16>
    %28 = vector.shape_cast %27 : vector<1x8x32xbf16> to vector<8x32xbf16>
    %29 = arith.extf %28 : vector<8x32xbf16> to vector<8x32xf32>
    %c0_30 = arith.constant 0 : index
    %c0_31 = arith.constant 0 : index
    %c0_32 = arith.constant 0 : index
    %30 = vector.load %arg8[%c0_30, %c0_31, %c0_32] : memref<1x8x32xbf16, #tpu.memory_space<vmem>>, vector<1x8x32xbf16>
    %31 = vector.shape_cast %30 : vector<1x8x32xbf16> to vector<8x32xbf16>
    %32 = arith.extf %31 : vector<8x32xbf16> to vector<8x32xf32>
    %c0_33 = arith.constant 0 : index
    %c0_34 = arith.constant 0 : index
    %c0_35 = arith.constant 0 : index
    %33 = vector.load %arg9[%c0_33, %c0_34, %c0_35] : memref<1x8x32xbf16, #tpu.memory_space<vmem>>, vector<1x8x32xbf16>
    %34 = vector.shape_cast %33 : vector<1x8x32xbf16> to vector<8x32xbf16>
    %35 = arith.extf %34 : vector<8x32xbf16> to vector<8x32xf32>
    %c0_36 = arith.constant 0 : index
    %c0_37 = arith.constant 0 : index
    %c0_38 = arith.constant 0 : index
    %36 = vector.load %arg10[%c0_36, %c0_37, %c0_38] : memref<1x8x32xbf16, #tpu.memory_space<vmem>>, vector<1x8x32xbf16>
    %37 = vector.shape_cast %36 : vector<1x8x32xbf16> to vector<8x32xbf16>
    %38 = arith.extf %37 : vector<8x32xbf16> to vector<8x32xf32>
    %cst = arith.constant 0.000000e+00 : f32
    %39 = vector.broadcast %cst : f32 to vector<8x32xf32>
    %40 = arith.cmpf ogt, %26, %39 : vector<8x32xf32>
    %cst_39 = arith.constant 0.000000e+00 : f32
    %41 = vector.broadcast %cst_39 : f32 to vector<8x32xf32>
    %42 = arith.select %40, %20, %41 : vector<8x32xi1>, vector<8x32xf32>
    %43 = arith.mulf %42, %26 : vector<8x32xf32>
    %44 = arith.subf %26, %43 : vector<8x32xf32>
    %cst_40 = arith.constant 0.000000e+00 : f32
    %45 = vector.broadcast %cst_40 : f32 to vector<8x32xf32>
    %46 = arith.cmpf ogt, %26, %45 : vector<8x32xf32>
    %cst_41 = arith.constant 0.000000e+00 : f32
    %47 = vector.broadcast %cst_41 : f32 to vector<8x32xf32>
    %48 = arith.select %46, %23, %47 : vector<8x32xi1>, vector<8x32xf32>
    %49 = arith.mulf %48, %26 : vector<8x32xf32>
    %50 = arith.mulf %8, %8 : vector<8x32xf32>
    %51 = arith.mulf %11, %11 : vector<8x32xf32>
    %52 = arith.addf %50, %51 : vector<8x32xf32>
    %cst_42 = arith.constant 9.99999993E-9 : f32
    %53 = vector.broadcast %cst_42 : f32 to vector<8x32xf32>
    %54 = arith.addf %52, %53 : vector<8x32xf32>
    %55 = math.rsqrt %54 : vector<8x32xf32>
    %56 = arith.mulf %8, %55 : vector<8x32xf32>
    %57 = arith.mulf %11, %55 : vector<8x32xf32>
    %cst_43 = arith.constant 0.000000e+00 : f32
    %58 = vector.broadcast %cst_43 : f32 to vector<8x32xf32>
    %59 = arith.maximumf %2, %58 : vector<8x32xf32>
    %60 = math.absf %2 : vector<8x32xf32>
    %cst_44 = arith.constant 0.000000e+00 : f32
    %61 = vector.broadcast %cst_44 : f32 to vector<8x32xf32>
    %62 = arith.subf %61, %60 : vector<8x32xf32>
    %63 = math.exp %62 : vector<8x32xf32>
    %64 = math.log1p %63 : vector<8x32xf32>
    %65 = arith.addf %59, %64 : vector<8x32xf32>
    %66 = arith.subf %65, %2 : vector<8x32xf32>
    %cst_45 = arith.constant 1.000000e+02 : f32
    %67 = vector.broadcast %cst_45 : f32 to vector<8x32xf32>
    %68 = arith.minimumf %66, %67 : vector<8x32xf32>
    %69 = arith.mulf %20, %68 : vector<8x32xf32>
    %cst_46 = arith.constant 1.000000e+00 : f32
    %70 = vector.broadcast %cst_46 : f32 to vector<8x32xf32>
    %71 = arith.subf %70, %20 : vector<8x32xf32>
    %cst_47 = arith.constant 1.000000e+02 : f32
    %72 = vector.broadcast %cst_47 : f32 to vector<8x32xf32>
    %73 = arith.minimumf %65, %72 : vector<8x32xf32>
    %74 = arith.mulf %71, %73 : vector<8x32xf32>
    %75 = arith.addf %69, %74 : vector<8x32xf32>
    %cst_48 = arith.constant 0.000000e+00 : f32
    %76 = vector.broadcast %cst_48 : f32 to vector<8x32xf32>
    %77 = arith.maximumf %5, %76 : vector<8x32xf32>
    %78 = math.absf %5 : vector<8x32xf32>
    %cst_49 = arith.constant 0.000000e+00 : f32
    %79 = vector.broadcast %cst_49 : f32 to vector<8x32xf32>
    %80 = arith.subf %79, %78 : vector<8x32xf32>
    %81 = math.exp %80 : vector<8x32xf32>
    %82 = math.log1p %81 : vector<8x32xf32>
    %83 = arith.addf %77, %82 : vector<8x32xf32>
    %84 = arith.subf %83, %5 : vector<8x32xf32>
    %cst_50 = arith.constant 1.000000e+02 : f32
    %85 = vector.broadcast %cst_50 : f32 to vector<8x32xf32>
    %86 = arith.minimumf %84, %85 : vector<8x32xf32>
    %87 = arith.mulf %23, %86 : vector<8x32xf32>
    %cst_51 = arith.constant 1.000000e+00 : f32
    %88 = vector.broadcast %cst_51 : f32 to vector<8x32xf32>
    %89 = arith.subf %88, %23 : vector<8x32xf32>
    %cst_52 = arith.constant 1.000000e+02 : f32
    %90 = vector.broadcast %cst_52 : f32 to vector<8x32xf32>
    %91 = arith.minimumf %83, %90 : vector<8x32xf32>
    %92 = arith.mulf %89, %91 : vector<8x32xf32>
    %93 = arith.addf %87, %92 : vector<8x32xf32>
    %cst_53 = arith.constant 0.000000e+00 : f32
    %94 = vector.broadcast %cst_53 : f32 to vector<8x32xf32>
    %95 = arith.cmpf ogt, %44, %94 : vector<8x32xf32>
    %cst_54 = arith.constant 0.000000e+00 : f32
    %96 = vector.broadcast %cst_54 : f32 to vector<8x32xf32>
    %97 = arith.select %95, %75, %96 : vector<8x32xi1>, vector<8x32xf32>
    %98 = arith.mulf %97, %44 : vector<8x32xf32>
    %cst_55 = arith.constant 0.000000e+00 : f32
    %99 = vector.broadcast %cst_55 : f32 to vector<8x96xf32>
    %100 = tpu.concatenate %98, %99 in 1 : vector<8x32xf32>, vector<8x96xf32> -> vector<8x128xf32>
    %c0_56 = arith.constant 0 : index
    %c0_57 = arith.constant 0 : index
    %c0_58 = arith.constant 0 : index
    %101 = vector.load %arg11[%c0_56, %c0_57, %c0_58] : memref<1x8x128xf32, #tpu.memory_space<vmem>>, vector<1x8x128xf32>
    %102 = vector.shape_cast %101 : vector<1x8x128xf32> to vector<8x128xf32>
    %103 = vector.shape_cast %100 : vector<8x128xf32> to vector<1x8x128xf32>
    tpu.vector_store %arg11[%c0_56, %c0_57, %c0_58], %103 {strides = array<i32>} : memref<1x8x128xf32, #tpu.memory_space<vmem>>, vector<1x8x128xf32>,
    %cst_59 = arith.constant 0.00999999977 : f32
    %104 = vector.broadcast %cst_59 : f32 to vector<8x32xf32>
    %105 = arith.addf %29, %104 : vector<8x32xf32>
    %106 = arith.divf %14, %105 : vector<8x32xf32>
    %cst_60 = arith.constant 1.000000e+00 : f32
    %107 = vector.broadcast %cst_60 : f32 to vector<8x32xf32>
    %108 = arith.subf %106, %107 : vector<8x32xf32>
    %109 = math.absf %108 : vector<8x32xf32>
    %cst_61 = arith.constant 1.000000e+00 : f32
    %110 = vector.broadcast %cst_61 : f32 to vector<8x32xf32>
    %111 = arith.cmpf olt, %109, %110 : vector<8x32xf32>
    %cst_62 = arith.constant 5.000000e-01 : f32
    %112 = vector.broadcast %cst_62 : f32 to vector<8x32xf32>
    %113 = arith.mulf %112, %108 : vector<8x32xf32>
    %114 = arith.mulf %113, %108 : vector<8x32xf32>
    %cst_63 = arith.constant 5.000000e-01 : f32
    %115 = vector.broadcast %cst_63 : f32 to vector<8x32xf32>
    %116 = arith.subf %109, %115 : vector<8x32xf32>
    %117 = arith.select %111, %114, %116 : vector<8x32xi1>, vector<8x32xf32>
    %cst_64 = arith.constant 0.00999999977 : f32
    %118 = vector.broadcast %cst_64 : f32 to vector<8x32xf32>
    %119 = arith.addf %32, %118 : vector<8x32xf32>
    %120 = arith.divf %17, %119 : vector<8x32xf32>
    %cst_65 = arith.constant 1.000000e+00 : f32
    %121 = vector.broadcast %cst_65 : f32 to vector<8x32xf32>
    %122 = arith.subf %120, %121 : vector<8x32xf32>
    %123 = math.absf %122 : vector<8x32xf32>
    %cst_66 = arith.constant 1.000000e+00 : f32
    %124 = vector.broadcast %cst_66 : f32 to vector<8x32xf32>
    %125 = arith.cmpf olt, %123, %124 : vector<8x32xf32>
    %cst_67 = arith.constant 5.000000e-01 : f32
    %126 = vector.broadcast %cst_67 : f32 to vector<8x32xf32>
    %127 = arith.mulf %126, %122 : vector<8x32xf32>
    %128 = arith.mulf %127, %122 : vector<8x32xf32>
    %cst_68 = arith.constant 5.000000e-01 : f32
    %129 = vector.broadcast %cst_68 : f32 to vector<8x32xf32>
    %130 = arith.subf %123, %129 : vector<8x32xf32>
    %131 = arith.select %125, %128, %130 : vector<8x32xi1>, vector<8x32xf32>
    %132 = arith.addf %29, %32 : vector<8x32xf32>
    %cst_69 = arith.constant 1.000000e+00 : f32
    %133 = vector.broadcast %cst_69 : f32 to vector<8x32xf32>
    %134 = arith.addf %132, %133 : vector<8x32xf32>
    %135 = math.log %134 : vector<8x32xf32>
    %136 = arith.addf %117, %131 : vector<8x32xf32>
    %137 = arith.mulf %135, %136 : vector<8x32xf32>
    %cst_70 = arith.constant 0.000000e+00 : f32
    %138 = vector.broadcast %cst_70 : f32 to vector<8x32xf32>
    %139 = arith.cmpf ogt, %43, %138 : vector<8x32xf32>
    %cst_71 = arith.constant 0.000000e+00 : f32
    %140 = vector.broadcast %cst_71 : f32 to vector<8x32xf32>
    %141 = arith.select %139, %75, %140 : vector<8x32xi1>, vector<8x32xf32>
    %142 = arith.mulf %141, %43 : vector<8x32xf32>
    %cst_72 = arith.constant 0.000000e+00 : f32
    %143 = vector.broadcast %cst_72 : f32 to vector<8x32xf32>
    %144 = arith.cmpf ogt, %43, %143 : vector<8x32xf32>
    %cst_73 = arith.constant 0.000000e+00 : f32
    %145 = vector.broadcast %cst_73 : f32 to vector<8x32xf32>
    %146 = arith.select %144, %93, %145 : vector<8x32xi1>, vector<8x32xf32>
    %147 = arith.mulf %146, %43 : vector<8x32xf32>
    %cst_74 = arith.constant 0.000000e+00 : f32
    %148 = vector.broadcast %cst_74 : f32 to vector<8x32xf32>
    %149 = arith.cmpf ogt, %44, %148 : vector<8x32xf32>
    %cst_75 = arith.constant 0.000000e+00 : f32
    %150 = vector.broadcast %cst_75 : f32 to vector<8x32xf32>
    %151 = arith.select %149, %93, %150 : vector<8x32xi1>, vector<8x32xf32>
    %152 = arith.mulf %151, %44 : vector<8x32xf32>
    %cst_76 = arith.constant 0.000000e+00 : f32
    %153 = vector.broadcast %cst_76 : f32 to vector<8x32xf32>
    %154 = arith.cmpf ogt, %49, %153 : vector<8x32xf32>
    %cst_77 = arith.constant 0.000000e+00 : f32
    %155 = vector.broadcast %cst_77 : f32 to vector<8x32xf32>
    %156 = arith.select %154, %137, %155 : vector<8x32xi1>, vector<8x32xf32>
    %157 = arith.mulf %156, %49 : vector<8x32xf32>
    %158 = arith.subf %56, %35 : vector<8x32xf32>
    %159 = math.absf %158 : vector<8x32xf32>
    %cst_78 = arith.constant 1.000000e+00 : f32
    %160 = vector.broadcast %cst_78 : f32 to vector<8x32xf32>
    %161 = arith.cmpf olt, %159, %160 : vector<8x32xf32>
    %cst_79 = arith.constant 5.000000e-01 : f32
    %162 = vector.broadcast %cst_79 : f32 to vector<8x32xf32>
    %163 = arith.mulf %162, %158 : vector<8x32xf32>
    %164 = arith.mulf %163, %158 : vector<8x32xf32>
    %cst_80 = arith.constant 5.000000e-01 : f32
    %165 = vector.broadcast %cst_80 : f32 to vector<8x32xf32>
    %166 = arith.subf %159, %165 : vector<8x32xf32>
    %167 = arith.select %161, %164, %166 : vector<8x32xi1>, vector<8x32xf32>
    %cst_81 = arith.constant 0.000000e+00 : f32
    %168 = vector.broadcast %cst_81 : f32 to vector<8x32xf32>
    %169 = arith.cmpf ogt, %49, %168 : vector<8x32xf32>
    %cst_82 = arith.constant 0.000000e+00 : f32
    %170 = vector.broadcast %cst_82 : f32 to vector<8x32xf32>
    %171 = arith.select %169, %167, %170 : vector<8x32xi1>, vector<8x32xf32>
    %172 = arith.mulf %171, %49 : vector<8x32xf32>
    %173 = arith.subf %57, %38 : vector<8x32xf32>
    %174 = math.absf %173 : vector<8x32xf32>
    %cst_83 = arith.constant 1.000000e+00 : f32
    %175 = vector.broadcast %cst_83 : f32 to vector<8x32xf32>
    %176 = arith.cmpf olt, %174, %175 : vector<8x32xf32>
    %cst_84 = arith.constant 5.000000e-01 : f32
    %177 = vector.broadcast %cst_84 : f32 to vector<8x32xf32>
    %178 = arith.mulf %177, %173 : vector<8x32xf32>
    %179 = arith.mulf %178, %173 : vector<8x32xf32>
    %cst_85 = arith.constant 5.000000e-01 : f32
    %180 = vector.broadcast %cst_85 : f32 to vector<8x32xf32>
    %181 = arith.subf %174, %180 : vector<8x32xf32>
    %182 = arith.select %176, %179, %181 : vector<8x32xi1>, vector<8x32xf32>
    %cst_86 = arith.constant 0.000000e+00 : f32
    %183 = vector.broadcast %cst_86 : f32 to vector<8x32xf32>
    %184 = arith.cmpf ogt, %49, %183 : vector<8x32xf32>
    %cst_87 = arith.constant 0.000000e+00 : f32
    %185 = vector.broadcast %cst_87 : f32 to vector<8x32xf32>
    %186 = arith.select %184, %182, %185 : vector<8x32xi1>, vector<8x32xf32>
    %187 = arith.mulf %186, %49 : vector<8x32xf32>
    %cst_88 = arith.constant dense<0.000000e+00> : vector<32xf32>
    %188 = vector.multi_reduction <add>, %43, %cst_88 [0] : vector<8x32xf32> to vector<32xf32>
    %189 = vector.shape_cast %188 : vector<32xf32> to vector<1x32xf32>
    %cst_89 = arith.constant dense<0.000000e+00> : vector<32xf32>
    %190 = vector.multi_reduction <add>, %44, %cst_89 [0] : vector<8x32xf32> to vector<32xf32>
    %191 = vector.shape_cast %190 : vector<32xf32> to vector<1x32xf32>
    %cst_90 = arith.constant dense<0.000000e+00> : vector<32xf32>
    %192 = vector.multi_reduction <add>, %142, %cst_90 [0] : vector<8x32xf32> to vector<32xf32>
    %193 = vector.shape_cast %192 : vector<32xf32> to vector<1x32xf32>
    %cst_91 = arith.constant dense<0.000000e+00> : vector<32xf32>
    %194 = vector.multi_reduction <add>, %147, %cst_91 [0] : vector<8x32xf32> to vector<32xf32>
    %195 = vector.shape_cast %194 : vector<32xf32> to vector<1x32xf32>
    %cst_92 = arith.constant dense<0.000000e+00> : vector<32xf32>
    %196 = vector.multi_reduction <add>, %152, %cst_92 [0] : vector<8x32xf32> to vector<32xf32>
    %197 = vector.shape_cast %196 : vector<32xf32> to vector<1x32xf32>
    %cst_93 = arith.constant dense<0.000000e+00> : vector<32xf32>
    %198 = vector.multi_reduction <add>, %49, %cst_93 [0] : vector<8x32xf32> to vector<32xf32>
    %199 = vector.shape_cast %198 : vector<32xf32> to vector<1x32xf32>
    %cst_94 = arith.constant dense<0.000000e+00> : vector<32xf32>
    %200 = vector.multi_reduction <add>, %157, %cst_94 [0] : vector<8x32xf32> to vector<32xf32>
    %201 = vector.shape_cast %200 : vector<32xf32> to vector<1x32xf32>
    %cst_95 = arith.constant dense<0.000000e+00> : vector<32xf32>
    %202 = vector.multi_reduction <add>, %172, %cst_95 [0] : vector<8x32xf32> to vector<32xf32>
    %203 = vector.shape_cast %202 : vector<32xf32> to vector<1x32xf32>
    %cst_96 = arith.constant dense<0.000000e+00> : vector<32xf32>
    %204 = vector.multi_reduction <add>, %187, %cst_96 [0] : vector<8x32xf32> to vector<32xf32>
    %205 = vector.shape_cast %204 : vector<32xf32> to vector<1x32xf32>
    %cst_97 = arith.constant dense<0.000000e+00> : vector<32xf32>
    %206 = vector.multi_reduction <add>, %98, %cst_97 [0] : vector<8x32xf32> to vector<32xf32>
    %207 = vector.shape_cast %206 : vector<32xf32> to vector<1x32xf32>
    %208 = tpu.concatenate %189, %191, %193, %195, %197, %199, %201, %203, %205, %207 in 0 : vector<1x32xf32>, vector<1x32xf32>, vector<1x32xf32>, vector<1x32xf32>, vector<1x32xf32>, vector<1x32xf32>, vector<1x32xf32>, vector<1x32xf32>, vector<1x32xf32>, vector<1x32xf32> -> vector<10x32xf32>
    %c0_i32 = arith.constant 0 : i32
    %209 = arith.cmpi eq, %arg2, %c0_i32 : i32
    %210 = arith.extui %209 : i1 to i32
    %c0_i32_98 = arith.constant 0 : i32
    %211 = arith.cmpi ne, %210, %c0_i32_98 : i32
    scf.if %211 {
      %c0_101 = arith.constant 0 : index
      %c0_102 = arith.constant 0 : index
      %c0_103 = arith.constant 0 : index
      %c0_104 = arith.constant 0 : index
      %215 = vector.load %arg12[%c0_101, %c0_102, %c0_103, %c0_104] : memref<1x1x10x32xf32, #tpu.memory_space<vmem>>, vector<1x1x10x32xf32>
      %216 = vector.shape_cast %215 : vector<1x1x10x32xf32> to vector<10x32xf32>
      %217 = vector.shape_cast %208 : vector<10x32xf32> to vector<1x1x10x32xf32>
      tpu.vector_store %arg12[%c0_101, %c0_102, %c0_103, %c0_104], %217 {strides = array<i32>} : memref<1x1x10x32xf32, #tpu.memory_space<vmem>>, vector<1x1x10x32xf32>,
    } else {
    }
    %c0_i32_99 = arith.constant 0 : i32
    %212 = arith.cmpi ne, %arg2, %c0_i32_99 : i32
    %213 = arith.extui %212 : i1 to i32
    %c0_i32_100 = arith.constant 0 : i32
    %214 = arith.cmpi ne, %213, %c0_i32_100 : i32
    scf.if %214 {
      %c0_101 = arith.constant 0 : index
      %c0_102 = arith.constant 0 : index
      %c0_103 = arith.constant 0 : index
      %c0_104 = arith.constant 0 : index
      %215 = vector.load %arg12[%c0_101, %c0_102, %c0_103, %c0_104] : memref<1x1x10x32xf32, #tpu.memory_space<vmem>>, vector<1x1x10x32xf32>
      %216 = vector.shape_cast %215 : vector<1x1x10x32xf32> to vector<10x32xf32>
      %217 = arith.addf %216, %208 : vector<10x32xf32>
      %c0_105 = arith.constant 0 : index
      %c0_106 = arith.constant 0 : index
      %c0_107 = arith.constant 0 : index
      %c0_108 = arith.constant 0 : index
      %218 = vector.load %arg12[%c0_105, %c0_106, %c0_107, %c0_108] : memref<1x1x10x32xf32, #tpu.memory_space<vmem>>, vector<1x1x10x32xf32>
      %219 = vector.shape_cast %218 : vector<1x1x10x32xf32> to vector<10x32xf32>
      %220 = vector.shape_cast %217 : vector<10x32xf32> to vector<1x1x10x32xf32>
      tpu.vector_store %arg12[%c0_105, %c0_106, %c0_107, %c0_108], %220 {strides = array<i32>} : memref<1x1x10x32xf32, #tpu.memory_space<vmem>>, vector<1x1x10x32xf32>,
    } else {
    }
    return
  }
  func.func @transform_0(%arg0: i32, %arg1: i32, %arg2: i32) -> (i32, i32, i32, i32) {
    %c2_i32 = arith.constant 2 : i32
    %0 = arith.muli %arg1, %c2_i32 : i32
    %1 = arith.addi %0, %arg2 : i32
    %c0_i32 = arith.constant 0 : i32
    %c0_i32_0 = arith.constant 0 : i32
    %c0_i32_1 = arith.constant 0 : i32
    return %arg0, %c0_i32, %1, %c0_i32_0 : i32, i32, i32, i32
  }
  func.func @transform_1(%arg0: i32, %arg1: i32, %arg2: i32) -> (i32, i32, i32) {
    %c2_i32 = arith.constant 2 : i32
    %0 = arith.muli %arg1, %c2_i32 : i32
    %1 = arith.addi %0, %arg2 : i32
    %c0_i32 = arith.constant 0 : i32
    %c0_i32_0 = arith.constant 0 : i32
    return %arg0, %1, %c0_i32 : i32, i32, i32
  }
  func.func @transform_2(%arg0: i32, %arg1: i32, %arg2: i32) -> (i32, i32, i32) {
    %c2_i32 = arith.constant 2 : i32
    %0 = arith.muli %arg1, %c2_i32 : i32
    %1 = arith.addi %0, %arg2 : i32
    %c0_i32 = arith.constant 0 : i32
    %c0_i32_0 = arith.constant 0 : i32
    return %arg0, %1, %c0_i32 : i32, i32, i32
  }
  func.func @transform_3(%arg0: i32, %arg1: i32, %arg2: i32) -> (i32, i32, i32) {
    %c2_i32 = arith.constant 2 : i32
    %0 = arith.muli %arg1, %c2_i32 : i32
    %1 = arith.addi %0, %arg2 : i32
    %c0_i32 = arith.constant 0 : i32
    %c0_i32_0 = arith.constant 0 : i32
    return %arg0, %1, %c0_i32 : i32, i32, i32
  }
  func.func @transform_4(%arg0: i32, %arg1: i32, %arg2: i32) -> (i32, i32, i32) {
    %c2_i32 = arith.constant 2 : i32
    %0 = arith.muli %arg1, %c2_i32 : i32
    %1 = arith.addi %0, %arg2 : i32
    %c0_i32 = arith.constant 0 : i32
    %c0_i32_0 = arith.constant 0 : i32
    return %arg0, %1, %c0_i32 : i32, i32, i32
  }
  func.func @transform_5(%arg0: i32, %arg1: i32, %arg2: i32) -> (i32, i32, i32) {
    %c2_i32 = arith.constant 2 : i32
    %0 = arith.muli %arg1, %c2_i32 : i32
    %1 = arith.addi %0, %arg2 : i32
    %c0_i32 = arith.constant 0 : i32
    %c0_i32_0 = arith.constant 0 : i32
    return %arg0, %1, %c0_i32 : i32, i32, i32
  }
  func.func @transform_6(%arg0: i32, %arg1: i32, %arg2: i32) -> (i32, i32, i32) {
    %c2_i32 = arith.constant 2 : i32
    %0 = arith.muli %arg1, %c2_i32 : i32
    %1 = arith.addi %0, %arg2 : i32
    %c0_i32 = arith.constant 0 : i32
    %c0_i32_0 = arith.constant 0 : i32
    return %arg0, %1, %c0_i32 : i32, i32, i32
  }
  func.func @transform_7(%arg0: i32, %arg1: i32, %arg2: i32) -> (i32, i32, i32) {
    %c2_i32 = arith.constant 2 : i32
    %0 = arith.muli %arg1, %c2_i32 : i32
    %1 = arith.addi %0, %arg2 : i32
    %c0_i32 = arith.constant 0 : i32
    %c0_i32_0 = arith.constant 0 : i32
    return %arg0, %1, %c0_i32 : i32, i32, i32
  }
  func.func @transform_8(%arg0: i32, %arg1: i32, %arg2: i32) -> (i32, i32, i32) {
    %c2_i32 = arith.constant 2 : i32
    %0 = arith.muli %arg1, %c2_i32 : i32
    %1 = arith.addi %0, %arg2 : i32
    %c0_i32 = arith.constant 0 : i32
    %c0_i32_0 = arith.constant 0 : i32
    return %arg0, %1, %c0_i32 : i32, i32, i32
  }
  func.func @transform_9(%arg0: i32, %arg1: i32, %arg2: i32) -> (i32, i32, i32, i32) {
    %c0_i32 = arith.constant 0 : i32
    %c0_i32_0 = arith.constant 0 : i32
    %c0_i32_1 = arith.constant 0 : i32
    return %arg0, %arg1, %c0_i32, %c0_i32_0 : i32, i32, i32, i32
  }
}

</mosaic_0001>

<bundles_post_ra>
// kernel: drrg_loss.1
= control target key start
LH: loop header
LB: loop body
LE: loop exit
PB: predicated region body
PF: predicated region fallthrough
CT: control target
= control target key end

     0   :  { %s2552_s0 = inlined_call_operand.hbm [shape: bf16[2,6,32,32], index: 0, kind: input, shape index: {}]   ;;  %s2553_s1 = inlined_call_operand.hbm [shape: bf16[2,32,32], index: 1, kind: input, shape index: {}]   ;;  %s2554_s2 = inlined_call_operand.hbm [shape: bf16[2,32,32], index: 2, kind: input, shape index: {}]   ;;  %s2555_s3 = inlined_call_operand.hbm [shape: bf16[2,32,32], index: 3, kind: input, shape index: {}]   ;;  %s2556_s4 = inlined_call_operand.hbm [shape: bf16[2,32,32], index: 4, kind: input, shape index: {}]   ;;  %s2557_s5 = inlined_call_operand.hbm [shape: bf16[2,32,32], index: 5, kind: input, shape index: {}]   ;;  %s2558_s6 = inlined_call_operand.hbm [shape: bf16[2,32,32], index: 6, kind: input, shape index: {}]   ;;  %s2559_s7 = inlined_call_operand.hbm [shape: bf16[2,32,32], index: 7, kind: input, shape index: {}]   ;;  %s2560_s8 = inlined_call_operand.vmem [shape: f32[2,32,128], index: 8, kind: output, shape index: {0}]   ;;  %s2561_s9 = inlined_call_operand.vmem [shape: f32[2,2,10,32], index: 9, kind: output, shape index: {1}]  }
   0x1   :  { %2576 = sst [smem:[#allocation30_spill]] %s2553_s1 }
   0x2   :  { %2577 = sst [smem:[#allocation31_spill]] %s2555_s3 }
   0x3   :  { %2578 = sst [smem:[#allocation32_spill]] %s2557_s5 }
   0x4   :  { %2579 = sst [smem:[#allocation33_spill]] %s2560_s8 }
   0x5   :  { %2580 = sst [smem:[#allocation34_spill]] %s2561_s9 }
   0x6   :  { %15 = vsyncpa [#allocation3], 0 }
   0x7   :  { %17 = vsyncpa [#allocation3 + $0x1], 0 }
   0x8   :  { %18 = vsyncpa [#allocation5], 0 }
   0x9   :  { %20 = vsyncpa [#allocation5 + $0x1], 0 }
   0xa   :  { %21 = vsyncpa [#allocation8], 0 }
   0xb   :  { %23 = vsyncpa [#allocation8 + $0x1], 0 }
   0xc   :  { %24 = vsyncpa [#allocation11], 0 }
   0xd   :  { %26 = vsyncpa [#allocation11 + $0x1], 0 }
   0xe   :  { %27 = vsyncpa [#allocation14], 0 }
   0xf   :  { %29 = vsyncpa [#allocation14 + $0x1], 0  ;;  %s1989_s30 = smov 0   ;;  %s1991_s10 = smov 0  }
  0x10   :  { %s1993_s11 = smov 0   ;;  %s1995_s12 = smov 0  }
  0x11   :  { %s1997_s13 = smov 0   ;;  %s1999_s14 = smov 0  }
  0x12   :  { %s2001_s15 = smov 0   ;;  %s2003_s16 = smov 0  }
  0x13   :  { %s2005_s17 = smov 0   ;;  %s2007_s18 = smov 0  }
  0x14 LB: > { %2581 = sst [smem:[#allocation20_spill]] %s1898_s11  ;;  %s2563_s19 = sadd.s32 4294967295, %s1926_s18   ;;  %s1926_s18 = sphi %s2007_s18, %s35_s18   ;;  %s1922_s17 = sphi %s2005_s17, %s2642_s17   ;;  %s1918_s16 = sphi %s2003_s16, %s2637_s16   ;;  %s1914_s15 = sphi %s2001_s15, %s2636_s15   ;;  %s1910_s14 = sphi %s1999_s14, %s2641_s14   ;;  %s1906_s13 = sphi %s1997_s13, %s2635_s13   ;;  %s1902_s12 = sphi %s1995_s12, %s2634_s12   ;;  %s1898_s11 = sphi %s1993_s11, %s2633_s11   ;;  %s1894_s10 = sphi %s1991_s10, %s2640_s10   ;;  %s1890_s30 = sphi %s1989_s30, %s2639_s30  }
  0x15   : > { %2582 = sst [smem:[#allocation21_spill]] %s1902_s12  ;;  %s47_s20 = sadd.s32 1, %s1914_s15 }
  0x16   : > { %2583 = sst [smem:[#allocation22_spill]] %s1906_s13  ;;  %p48_p0 = scmp.ge.s32.totalorder %s47_s20, 2 }
  0x17   : > { %2584 = sst [smem:[#allocation23_spill]] %s1910_s14  ;;  %s50_s21 = sadd.s32 1, %s1918_s16 }
  0x18   : > { %2585 = sst [smem:[#allocation24_spill]] %s1914_s15  ;;  %s54_s22 = sadd.s32 1, %s1922_s17 }
  0x19   : > { %2586 = sst [smem:[#allocation25_spill]] %s1918_s16  ;;  %s1351_s23 = sshll.u32 %s1918_s16, 1 }
  0x1a   : > { %s2644_s20 = smov (%p48_p0, %s47_s20), 0  ;;  %s2646_s21 = smov (!%p48_p0, %s50_s21), %s1918_s16 }
  0x1b   : > { %2587 = sst [smem:[#allocation26_spill]] %s2644_s20  ;;  %s2048_s24 = sadd.s32 %s1914_s15, %s1351_s23 }
  0x1c   : > { %s67_s25 = sadd.s32 1, %s1898_s11  ;;  %p52_p1 = scmp.ge.s32.totalorder %s2646_s21, 2 }
  0x1d   : > { %p74_p2 = scmp.ne.s32.totalorder %s1898_s11, %s1894_s10  ;;  %p75_p3 = scmp.eq.s32.totalorder %s1926_s18, 0 }
  0x1e   : > { %p80_p4 = scmp.ne.s32.totalorder %s1894_s10, %s1890_s30  ;;  %s2648_s21 = smov (%p52_p1, %s2646_s21), 0 }
  0x1f   : > { %2588 = sst [smem:[#allocation27_spill]] %s2648_s21  ;;  %s2650_s22 = smov (!%p52_p1, %s54_s22), %s1922_s17 }
  0x20   : > { %s1352_s26 = sshll.u32 %s2648_s21, 1  ;;  %p76_p5 = por %p75_p3, %p74_p2 }
  0x21   : > { %p56_p6 = scmp.ge.s32.totalorder %s2650_s22, 2  ;;  %s61_s27 = sadd.s32 %s1352_s26, %s2644_s20 }
  0x22   : > { %s63_s28 = ssub.s32 %s2048_s24, %s61_s27  ;;  %p81_p7 = scmp.eq.s32.totalorder %s2563_s19, 0 }
  0x23   : > { %s2652_s22 = smov (%p56_p6, %s2650_s22), 0  ;;  %p1488_p9 = scmp.lt.s32.totalorder %s1926_s18, 8 }
  0x24   : > { %2589 = sst [smem:[#allocation28_spill]] %s2652_s22  ;;  %p2066_p8 = por %p81_p7, %p80_p4 }
  0x25   : > { %s62_s30 = ssub.s32 %s1922_s17, %s2652_s22  ;;  %s2074_s21 = sand.u32 1, %s1898_s11  }
  0x26   : > { %s2590_s29 = scalar_select %p2066_p8, 1, 0 }
  0x27   : > { %s64_s23 = sor.u32 %s63_s28, %s62_s30  ;;  %p2076_p11 = pnand %p1488_p9, %p76_p5 }
  0x28   : > { %p65_p10 = scmp.eq.s32.totalorder %s64_s23, 0  ;;  %s2081_s27 = sand.u32 1, %s1926_s18  }
  0x29   : > { %s2591_s26 = scalar_select %p2076_p11, 1, 0 }
  0x2a   : > { %s2084_s19 = sshll.u32 %s2074_s21, 2  ;;  %s1375_s22 = sshll.u32 %s1922_s17, 2 }
  0x2b   : > { %s2087_s20 = scalar_select %p65_p10, %s1898_s11, %s67_s25  }
  0x2c   : > { %s423_s16 = sadd.s32 %s1375_s22, %s2048_s24  ;;  %s416_s28 = scalar_lea.vmem [#allocation4], %s2084_s19 }
  0x2d   : > { %2592 = sst [smem:[#allocation29_spill]] %s2087_s20  ;;  %s427_s30 = sshll.u32 %s416_s28, 4  ;;  %s2094_s30 = int_to_ptr.vmem [resolvable:$true] %s427_s30 }
  0x2e   : > { %s2092_s15 = sshll.u32 %s423_s16, 6  ;;  %s2593_s1 = sld [smem:[#allocation30_spill]] }
  0x2f   : > { %p2108_p0 = pneg %p2076_p11 }
  0x34   : > { %s2100_s12 = scalar_lea.hbm %s2593_s1, %s2092_s15  ;;  %s1593_s28 = scalar_lea.hbm %s2593_s1, 512 }
  0x35   : > { %s1588_s20 = scalar_lea.hbm %s2100_s12, 64  ;;  %p1594_p3 = scmp.lt.u32.totalorder %s2100_s12, %s2593_s1 }
  0x36   : > { %p1589_p13 = scmp.ne.s32.totalorder %s2100_s12, %s1588_s20  ;;  %p1595_p4 = scmp.lt.u32.totalorder %s1593_s28, %s1588_s20 }
  0x37   : > { %p1597_p6 = scmp.lt.u32.totalorder %s1588_s20, %s2100_s12 }
  0x38   : > { %p1591_p1 = pnand %p2108_p0, %p1589_p13  ;;  %p1596_p5 = por %p1595_p4, %p1594_p3 }
  0x3a   : > { %p1592_p2 = pneg %p1591_p1  ;;  %p1598_p7 = por %p1597_p6, %p1596_p5 }
  0x3c   : > { %p1599_p9 = pnand %p1598_p7, %p1592_p2 }
  0x3e   : > { %1602 = shalt.err (!%p1599_p9)
}
  0x3f   : > { %s1603_s25 = scalar_lea.vmem %s2094_s30, 64  ;;  %s1928_s8 = smov [#allocation4]  }
  0x40   : > { %p1604_p10 = scmp.ne.s32.totalorder %s2094_s30, %s1603_s25  ;;  %s1608_s22 = sshll.u32 %s1928_s8, 4  ;;  %s1609_s22 = int_to_ptr.vmem [resolvable:$false] %s1608_s22 }
  0x41   : > { %s1610_s11 = scalar_lea.vmem %s1609_s22, 128  ;;  %p1611_p12 = scmp.lt.s32.totalorder %s2094_s30, %s1609_s22 }
  0x42   : > { %p1606_p13 = pnand %p1604_p10, %p2108_p0  ;;  %p1612_p8 = scmp.lt.s32.totalorder %s1610_s11, %s1603_s25 }
  0x44   : > { %p1607_p1 = pneg %p1606_p13  ;;  %p1613_p3 = por %p1612_p8, %p1611_p12 }
  0x46   : > { %p1614_p4 = pnand %p1613_p3, %p1607_p1 }
  0x48   : > { %1617 = shalt.err (!%p1614_p4)
}
  0x49   : > { %s2595_s20 = scalar_lea.sflag [#allocation5], %s2081_s27  ;;  %p564_p2 = scmp.lt.s32.totalorder %s1926_s18, 9 }
  0x4a   : > { %1469 = dma.hbm_to_vmem [thread:$0]  (!%p2076_p11), %s2100_s12, 64, %s2094_s30, %s2595_s20  }
  0x4b   : > { %s2596_s3 = sld [smem:[#allocation31_spill]]  ;;  %p2597_p8 = scmp.ge.s32.totalorder %s1926_s18, 1 }
  0x4c   : > { %s460_s22 = scalar_lea.vmem [#allocation7], %s2084_s19 }
  0x4d   : > { %p2142_p12 = pnand %p2597_p8, %p564_p2  ;;  %s471_s11 = sshll.u32 %s460_s22, 4  ;;  %s472_s11 = int_to_ptr.vmem [resolvable:$true] %s471_s11 }
  0x4f   : > { %s2598_s8 = scalar_select %p2142_p12, 1, 0 }
  0x51   : > { %s2138_s25 = scalar_lea.hbm %s2596_s3, %s2092_s15  ;;  %s1623_s28 = scalar_lea.hbm %s2596_s3, 512 }
  0x52   : > { %s1618_s12 = scalar_lea.hbm %s2138_s25, 64  ;;  %p1624_p9 = scmp.lt.u32.totalorder %s2138_s25, %s2596_s3 }
  0x53   : > { %p1619_p5 = scmp.ne.s32.totalorder %s2138_s25, %s1618_s12  ;;  %p1625_p10 = scmp.lt.u32.totalorder %s1623_s28, %s1618_s12 }
  0x54   : > { %p1627_p1 = scmp.lt.u32.totalorder %s1618_s12, %s2138_s25 }
  0x55   : > { %p1621_p6 = pnand %p1619_p5, %p2108_p0  ;;  %p1626_p13 = por %p1625_p10, %p1624_p9 }
  0x57   : > { %p1622_p7 = pneg %p1621_p6  ;;  %p1628_p3 = por %p1627_p1, %p1626_p13 }
  0x59   : > { %p1629_p4 = pnand %p1628_p3, %p1622_p7 }
  0x5b   : > { %1632 = shalt.err (!%p1629_p4)
}
  0x5c   : > { %s1633_s22 = scalar_lea.vmem %s472_s11, 64  ;;  %s1929_s1 = smov [#allocation7]  }
  0x5d   : > { %p1634_p2 = scmp.ne.s32.totalorder %s472_s11, %s1633_s22  ;;  %s1638_s13 = sshll.u32 %s1929_s1, 4  ;;  %s1639_s13 = int_to_ptr.vmem [resolvable:$false] %s1638_s13 }
  0x5e   : > { %s1640_s30 = scalar_lea.vmem %s1639_s13, 128  ;;  %p1641_p6 = scmp.lt.s32.totalorder %s472_s11, %s1639_s13 }
  0x5f   : > { %p1636_p8 = pnand %p1634_p2, %p2108_p0  ;;  %p1642_p12 = scmp.lt.s32.totalorder %s1640_s30, %s1633_s22 }
  0x61   : > { %p1637_p5 = pneg %p1636_p8  ;;  %p1643_p11 = por %p1642_p12, %p1641_p6 }
  0x63   : > { %p1644_p9 = pnand %p1643_p11, %p1637_p5 }
  0x65   : > { %1647 = shalt.err (!%p1644_p9)
}
  0x66   : > { %p2599_p10 = scmp.ne.s32.totalorder %s2591_s26, 0  ;;  %s2600_s9 = scalar_lea.sflag [#allocation8], %s2081_s27 }
  0x67   : > { %s2601_s5 = sld [smem:[#allocation32_spill]]  ;;  %s504_s13 = scalar_lea.vmem [#allocation10], %s2084_s19 }
  0x68   : > { %1475 = dma.hbm_to_vmem [thread:$0]  (!%p2599_p10), %s2138_s25, 64, %s472_s11, %s2600_s9  }
  0x69   : > { %s515_s28 = sshll.u32 %s504_s13, 4  ;;  %s516_s28 = int_to_ptr.vmem [resolvable:$true] %s515_s28 }
  0x6d   : > { %s2171_s1 = scalar_lea.hbm %s2601_s5, %s2092_s15  ;;  %s1653_s11 = scalar_lea.hbm %s2601_s5, 512 }
  0x6e   : > { %s1648_s22 = scalar_lea.hbm %s2171_s1, 64  ;;  %p1654_p13 = scmp.lt.u32.totalorder %s2171_s1, %s2601_s5 }
  0x6f   : > { %p1649_p11 = scmp.ne.s32.totalorder %s2171_s1, %s1648_s22  ;;  %p1655_p1 = scmp.lt.u32.totalorder %s1653_s11, %s1648_s22 }
  0x70   : > { %p1657_p4 = scmp.lt.u32.totalorder %s1648_s22, %s2171_s1 }
  0x71   : > { %p1651_p12 = pnand %p1649_p11, %p2108_p0  ;;  %p1656_p3 = por %p1655_p1, %p1654_p13 }
  0x73   : > { %p1652_p7 = pneg %p1651_p12  ;;  %p1658_p2 = por %p1657_p4, %p1656_p3 }
  0x75   : > { %p1659_p8 = pnand %p1658_p2, %p1652_p7 }
  0x77   : > { %1662 = shalt.err (!%p1659_p8)
}
  0x78   : > { %s1663_s20 = scalar_lea.vmem %s516_s28, 64  ;;  %s1930_s13 = smov [#allocation10]  }
  0x79   : > { %p1664_p5 = scmp.ne.s32.totalorder %s516_s28, %s1663_s20  ;;  %s1668_s23 = sshll.u32 %s1930_s13, 4  ;;  %s1669_s23 = int_to_ptr.vmem [resolvable:$false] %s1668_s23 }
  0x7a   : > { %s1670_s30 = scalar_lea.vmem %s1669_s23, 128  ;;  %p1671_p11 = scmp.lt.s32.totalorder %s516_s28, %s1669_s23 }
  0x7b   : > { %p1666_p6 = pnand %p1664_p5, %p2108_p0  ;;  %p1672_p12 = scmp.lt.s32.totalorder %s1670_s30, %s1663_s20 }
  0x7d   : > { %p1667_p9 = pneg %p1666_p6  ;;  %p1673_p10 = por %p1672_p12, %p1671_p11 }
  0x7f   : > { %p1674_p1 = pnand %p1673_p10, %p1667_p9 }
  0x81   : > { %1677 = shalt.err (!%p1674_p1)
}
  0x82   : > { %p2602_p13 = scmp.ne.s32.totalorder %s2591_s26, 0  ;;  %s2603_s22 = scalar_lea.sflag [#allocation11], %s2081_s27 }
  0x83   : > { %s1444_s25 = smul.u32 24, %s2074_s21  ;;  %s389_s5 = scalar_lea.sflag [#allocation3], %s2074_s21 }
  0x84   : > { %1481 = dma.hbm_to_vmem [thread:$0]  (!%p2602_p13), %s2171_s1, 64, %s516_s28, %s2603_s22  }
  0x85   : > { %s1445_s11 = smul.u32 24, %s1922_s17  ;;  %s392_s12 = scalar_lea.vmem [#allocation2], %s1444_s25 }
  0x86   : > { %s402_s23 = sshll.u32 %s392_s12, 4  ;;  %s1683_s28 = scalar_lea.hbm %s2552_s0, 3072  ;;  %s2197_s23 = int_to_ptr.vmem [resolvable:$true] %s402_s23 }
  0x87   : > { %s399_s9 = sadd.s32 %s1445_s11, %s2048_s24 }
  0x88   : > { %s1372_s20 = sshll.u32 %s399_s9, 6 }
  0x89   : > { %s2202_s3 = scalar_lea.hbm %s2552_s0, %s1372_s20 }
  0x8a   : > { %s1678_s14 = scalar_lea.hbm %s2202_s3, 384  ;;  %p1684_p4 = scmp.lt.u32.totalorder %s2202_s3, %s2552_s0 }
  0x8b   : > { %p1679_p10 = scmp.ne.s32.totalorder %s2202_s3, %s1678_s14  ;;  %p1685_p2 = scmp.lt.u32.totalorder %s1683_s28, %s1678_s14 }
  0x8c   : > { %p1687_p5 = scmp.lt.u32.totalorder %s1678_s14, %s2202_s3 }
  0x8d   : > { %p1681_p7 = pnand %p1679_p10, %p2108_p0  ;;  %p1686_p8 = por %p1685_p2, %p1684_p4 }
  0x8f   : > { %p1682_p3 = pneg %p1681_p7  ;;  %p1688_p6 = por %p1687_p5, %p1686_p8 }
  0x91   : > { %p1689_p9 = pnand %p1688_p6, %p1682_p3 }
  0x93   : > { %1692 = shalt.err (!%p1689_p9)
}
  0x94   : > { %s1693_s11 = scalar_lea.vmem %s2197_s23, 384  ;;  %s1931_s9 = smov [#allocation2]  }
  0x95   : > { %p1694_p11 = scmp.ne.s32.totalorder %s2197_s23, %s1693_s11  ;;  %s1698_s12 = sshll.u32 %s1931_s9, 4  ;;  %s1699_s12 = int_to_ptr.vmem [resolvable:$false] %s1698_s12 }
  0x96   : > { %s1700_s20 = scalar_lea.vmem %s1699_s12, 768  ;;  %p1701_p10 = scmp.lt.s32.totalorder %s2197_s23, %s1699_s12 }
  0x97   : > { %p1696_p12 = pnand %p1694_p11, %p2108_p0  ;;  %p1702_p7 = scmp.lt.s32.totalorder %s1700_s20, %s1693_s11 }
  0x99   : > { %p1697_p1 = pneg %p1696_p12  ;;  %p1703_p4 = por %p1702_p7, %p1701_p10 }
  0x9b   : > { %p1704_p2 = pnand %p1703_p4, %p1697_p1 }
  0x9d   : > { %1707 = shalt.err (!%p1704_p2)
}
  0x9e   : > { %s1932_s14 = smov 256   ;;  %s1933_s13 = smov 64  }
  0x9f   : > { %s1934_s30 = smov 4   ;;  %s2232_s28 = scalar_lea.hbm %s2554_s2, %s2092_s15 }
  0xa0   : > { %1466 = dma.hbm_to_vmem [thread:$0]  (!%p2602_p13), %s2202_s3, 384, %s2197_s23, %s389_s5, %s1932_s14, %s1933_s13, %s1934_s30  }
  0xa1   : > { %s438_s22 = scalar_lea.vmem [#allocation6], %s2084_s19  ;;  %s2239_s12 = scalar_lea.hbm %s2556_s4, %s2092_s15 }
  0xa2   : > { %s449_s25 = sshll.u32 %s438_s22, 4  ;;  %s1708_s20 = scalar_lea.hbm %s2232_s28, 64  ;;  %s450_s25 = int_to_ptr.vmem [resolvable:$true] %s449_s25 }
  0xa3   : > { %p1709_p3 = scmp.ne.s32.totalorder %s2232_s28, %s1708_s20  ;;  %s1713_s23 = scalar_lea.hbm %s2554_s2, 512 }
  0xa4   : > { %p1714_p6 = scmp.lt.u32.totalorder %s2232_s28, %s2554_s2  ;;  %p1715_p9 = scmp.lt.u32.totalorder %s1713_s23, %s1708_s20 }
  0xa5   : > { %p1711_p8 = pnand %p1709_p3, %p2108_p0  ;;  %p1717_p12 = scmp.lt.u32.totalorder %s1708_s20, %s2232_s28 }
  0xa6   : > { %p1716_p11 = por %p1715_p9, %p1714_p6 }
  0xa7   : > { %p1712_p5 = pneg %p1711_p8 }
  0xa8   : > { %p1718_p1 = por %p1717_p12, %p1716_p11 }
  0xaa   : > { %p1719_p10 = pnand %p1718_p1, %p1712_p5 }
  0xac   : > { %1722 = shalt.err (!%p1719_p10)
}
  0xad   : > { %s1723_s30 = scalar_lea.vmem %s450_s25, 64  ;;  %s1935_s24 = smov [#allocation6]  }
  0xae   : > { %p1724_p7 = scmp.ne.s32.totalorder %s450_s25, %s1723_s30  ;;  %s1728_s1 = sshll.u32 %s1935_s24, 4  ;;  %s1729_s1 = int_to_ptr.vmem [resolvable:$false] %s1728_s1 }
  0xaf   : > { %s1730_s22 = scalar_lea.vmem %s1729_s1, 128  ;;  %p1731_p3 = scmp.lt.s32.totalorder %s450_s25, %s1729_s1 }
  0xb0   : > { %p1726_p4 = pnand %p1724_p7, %p2108_p0  ;;  %p1732_p8 = scmp.lt.s32.totalorder %s1730_s22, %s1723_s30 }
  0xb2   : > { %p1727_p2 = pneg %p1726_p4  ;;  %p1733_p13 = por %p1732_p8, %p1731_p3 }
  0xb4   : > { %p1734_p6 = pnand %p1733_p13, %p1727_p2 }
  0xb6   : > { %1737 = shalt.err (!%p1734_p6)
}
  0xb7   : > { %p2604_p9 = scmp.ne.s32.totalorder %s2591_s26, 0  ;;  %s2605_s11 = scalar_lea.sflag [#allocation5], %s2081_s27 }
  0xb8   : > { %s482_s9 = scalar_lea.vmem [#allocation9], %s2084_s19  ;;  %s2265_s23 = scalar_lea.hbm %s2558_s6, %s2092_s15 }
  0xb9   : > { %1472 = dma.hbm_to_vmem [thread:$0]  (!%p2604_p9), %s2232_s28, 64, %s450_s25, %s2605_s11  }
  0xba   : > { %s493_s20 = sshll.u32 %s482_s9, 4  ;;  %s1738_s14 = scalar_lea.hbm %s2239_s12, 64  ;;  %s494_s20 = int_to_ptr.vmem [resolvable:$true] %s493_s20 }
  0xbb   : > { %p1739_p13 = scmp.ne.s32.totalorder %s2239_s12, %s1738_s14  ;;  %s1743_s24 = scalar_lea.hbm %s2556_s4, 512 }
  0xbc   : > { %p1744_p12 = scmp.lt.u32.totalorder %s2239_s12, %s2556_s4  ;;  %p1745_p1 = scmp.lt.u32.totalorder %s1743_s24, %s1738_s14 }
  0xbd   : > { %p1741_p5 = pnand %p1739_p13, %p2108_p0  ;;  %p1747_p7 = scmp.lt.u32.totalorder %s1738_s14, %s2239_s12 }
  0xbe   : > { %p1746_p10 = por %p1745_p1, %p1744_p12 }
  0xbf   : > { %p1742_p11 = pneg %p1741_p5 }
  0xc0   : > { %p1748_p4 = por %p1747_p7, %p1746_p10 }
  0xc2   : > { %p1749_p2 = pnand %p1748_p4, %p1742_p11 }
  0xc4   : > { %1752 = shalt.err (!%p1749_p2)
}
  0xc5   : > { %s1753_s28 = scalar_lea.vmem %s494_s20, 64  ;;  %s1936_s25 = smov [#allocation9]  }
  0xc6   : > { %p1754_p3 = scmp.ne.s32.totalorder %s494_s20, %s1753_s28  ;;  %s1758_s11 = sshll.u32 %s1936_s25, 4  ;;  %s1759_s11 = int_to_ptr.vmem [resolvable:$false] %s1758_s11 }
  0xc7   : > { %s1760_s9 = scalar_lea.vmem %s1759_s11, 128  ;;  %p1761_p13 = scmp.lt.s32.totalorder %s494_s20, %s1759_s11 }
  0xc8   : > { %p1756_p8 = pnand %p1754_p3, %p2108_p0  ;;  %p1762_p5 = scmp.lt.s32.totalorder %s1760_s9, %s1753_s28 }
  0xca   : > { %p1757_p6 = pneg %p1756_p8  ;;  %p1763_p9 = por %p1762_p5, %p1761_p13 }
  0xcc   : > { %p1764_p1 = pnand %p1763_p9, %p1757_p6 }
  0xce   : > { %1767 = shalt.err (!%p1764_p1)
}
  0xcf   : > { %p2606_p12 = scmp.ne.s32.totalorder %s2591_s26, 0  ;;  %s2607_s3 = scalar_lea.sflag [#allocation8], %s2081_s27 }
  0xd0   : > { %s526_s5 = scalar_lea.vmem [#allocation12], %s2084_s19  ;;  %s1768_s13 = scalar_lea.hbm %s2265_s23, 64 }
  0xd1   : > { %1478 = dma.hbm_to_vmem [thread:$0]  (!%p2606_p12), %s2239_s12, 64, %s494_s20, %s2607_s3  }
  0xd2   : > { %s537_s14 = sshll.u32 %s526_s5, 4  ;;  %p1769_p11 = scmp.ne.s32.totalorder %s2265_s23, %s1768_s13  ;;  %s538_s14 = int_to_ptr.vmem [resolvable:$true] %s537_s14 }
  0xd3   : > { %s1773_s1 = scalar_lea.hbm %s2558_s6, 512  ;;  %p1774_p7 = scmp.lt.u32.totalorder %s2265_s23, %s2558_s6 }
  0xd4   : > { %p1771_p9 = pnand %p1769_p11, %p2108_p0  ;;  %p1775_p4 = scmp.lt.u32.totalorder %s1773_s1, %s1768_s13 }
  0xd5   : > { %p1777_p3 = scmp.lt.u32.totalorder %s1768_s13, %s2265_s23 }
  0xd6   : > { %p1772_p10 = pneg %p1771_p9  ;;  %p1776_p2 = por %p1775_p4, %p1774_p7 }
  0xd8   : > { %p1778_p8 = por %p1777_p3, %p1776_p2 }
  0xda   : > { %p1779_p6 = pnand %p1778_p8, %p1772_p10 }
  0xdc   : > { %1782 = shalt.err (!%p1779_p6)
}
  0xdd   : > { %s1783_s12 = scalar_lea.vmem %s538_s14, 64  ;;  %s1937_s20 = smov [#allocation12]  }
  0xde   : > { %p1784_p13 = scmp.ne.s32.totalorder %s538_s14, %s1783_s12  ;;  %s1788_s25 = sshll.u32 %s1937_s20, 4  ;;  %s1789_s25 = int_to_ptr.vmem [resolvable:$false] %s1788_s25 }
  0xdf   : > { %s1790_s11 = scalar_lea.vmem %s1789_s25, 128  ;;  %p1791_p11 = scmp.lt.s32.totalorder %s538_s14, %s1789_s25 }
  0xe0   : > { %p1786_p5 = pnand %p1784_p13, %p2108_p0  ;;  %p1792_p9 = scmp.lt.s32.totalorder %s1790_s11, %s1783_s12 }
  0xe2   : > { %p1787_p1 = pneg %p1786_p5  ;;  %p1793_p12 = por %p1792_p9, %p1791_p11 }
  0xe4   : > { %p1794_p4 = pnand %p1793_p12, %p1787_p1 }
  0xe6   : > { %1797 = shalt.err (!%p1794_p4)
}
  0xe7   : > { %p2608_p7 = scmp.ne.s32.totalorder %s2591_s26, 0  ;;  %s2609_s9 = scalar_lea.sflag [#allocation11], %s2081_s27 }
  0xe8   : > { %s2310_s13 = scalar_lea.hbm %s2559_s7, %s2092_s15  ;;  %s548_s30 = scalar_lea.vmem [#allocation13], %s2084_s19 }
  0xe9   : > { %1484 = dma.hbm_to_vmem [thread:$0]  (!%p2608_p7), %s2265_s23, 64, %s538_s14, %s2609_s9  }
  0xea   : > { %s559_s24 = sshll.u32 %s548_s30, 4  ;;  %s545_s1 = scalar_lea.sflag [#allocation14], %s2074_s21  ;;  %s560_s24 = int_to_ptr.vmem [resolvable:$true] %s559_s24 }
  0xeb   : > { %s1798_s27 = scalar_lea.hbm %s2310_s13, 64  ;;  %s1803_s14 = scalar_lea.hbm %s2559_s7, 512 }
  0xec   : > { %p1799_p12 = scmp.ne.s32.totalorder %s2310_s13, %s1798_s27  ;;  %p1804_p3 = scmp.lt.u32.totalorder %s2310_s13, %s2559_s7 }
  0xed   : > { %p1805_p8 = scmp.lt.u32.totalorder %s1803_s14, %s1798_s27  ;;  %p1807_p13 = scmp.lt.u32.totalorder %s1798_s27, %s2310_s13 }
  0xee   : > { %p1801_p10 = pnand %p1799_p12, %p2108_p0 }
  0xef   : > { %p1806_p6 = por %p1805_p8, %p1804_p3 }
  0xf0   : > { %p1802_p2 = pneg %p1801_p10 }
  0xf1   : > { %p1808_p5 = por %p1807_p13, %p1806_p6 }
  0xf3   : > { %p1809_p1 = pnand %p1808_p5, %p1802_p2 }
  0xf5   : > { %1812 = shalt.err (!%p1809_p1)
}
  0xf6   : > { %s1813_s19 = scalar_lea.vmem %s560_s24, 64  ;;  %s1938_s21 = smov [#allocation13]  }
  0xf7   : > { %p1814_p11 = scmp.ne.s32.totalorder %s560_s24, %s1813_s19  ;;  %s1818_s12 = sshll.u32 %s1938_s21, 4  ;;  %s1819_s12 = int_to_ptr.vmem [resolvable:$false] %s1818_s12 }
  0xf8   : > { %s1820_s20 = scalar_lea.vmem %s1819_s12, 128  ;;  %p1821_p12 = scmp.lt.s32.totalorder %s560_s24, %s1819_s12 }
  0xf9   : > { %p1816_p9 = pnand %p1814_p11, %p2108_p0  ;;  %p1822_p10 = scmp.lt.s32.totalorder %s1820_s20, %s1813_s19 }
  0xfb   : > { %p1817_p4 = pneg %p1816_p9  ;;  %p1823_p7 = por %p1822_p10, %p1821_p12 }
  0xfd   : > { %p1824_p3 = pnand %p1823_p7, %p1817_p4 }
  0xff   : > { %1827 = shalt.err (!%p1824_p3)
}
 0x100   : > { %p2610_p8 = scmp.ne.s32.totalorder %s2591_s26, 0  ;;  %p2611_p2 = scmp.ne.s32.totalorder %s2598_s8, 0 }
 0x101   : > { %s570_s16 = sand.u32 (!%p2611_p2), 1, %s1894_s10   ;;  %p2612_p0 = scmp.ne.s32.totalorder (!%p2611_p2), %s2590_s29, 0 }
 0x102   : > { %1487 = dma.hbm_to_vmem [thread:$0]  (!%p2610_p8), %s2310_s13, 64, %s560_s24, %s545_s1  }
 0x103   : > { %568 = sbr.rel (%p2611_p2) target bundleno = 365 (0x16d), region = 52  ;;  %s571_s11 = scalar_lea.sflag (!%p2611_p2), [#allocation3], %s570_s16 }
 0x104   : > { %s1446_s25 = smul.u32 (!%p2611_p2), 24, %s570_s16 }
 0x106   : > { %s2334_s9 = scalar_lea.vmem (!%p2611_p2), [#allocation2], %s1446_s25 }
 0x10a   : > { %1869 = dma.done.wait (%p2612_p0), %s571_s11, 384  }
 0x10b   : > { %1871 = vsyncadd (%p2612_p0), %s571_s11, 4294966912  ;;  %s2613_s3 = sadd.s32 4294967295, %s1926_s18   ;;  %s2342_s5 = sshll.u32 %s570_s16, 2 }
 0x10c   : > { %s579_s26 = sand.u32 1, %s2613_s3   ;;  %s583_s13 = scalar_lea.vmem [#allocation4], %s2342_s5 }
 0x10d   : > { %s580_s8 = scalar_lea.sflag [#allocation5], %s579_s26 }
 0x10e   : > { %1873 = dma.done.wait (%p2612_p0), %s580_s8, 128  }
 0x10f   : > { %1875 = vsyncadd (%p2612_p0), %s580_s8, 4294967168  ;;  %s592_s30 = scalar_lea.vmem [#allocation6], %s2342_s5  ;;  %s598_s24 = scalar_lea.sflag [#allocation8], %s579_s26 }
 0x110   : > { %s601_s1 = scalar_lea.vmem [#allocation7], %s2342_s5 }
 0x111   : > { %1877 = dma.done.wait (%p2612_p0), %s598_s24, 128  }
 0x112   : > { %1879 = vsyncadd (%p2612_p0), %s598_s24, 4294967168  ;;  %s610_s27 = scalar_lea.vmem [#allocation9], %s2342_s5  ;;  %s616_s22 = scalar_lea.sflag [#allocation11], %s579_s26 }
 0x113   : > { %s619_s23 = scalar_lea.vmem [#allocation10], %s2342_s5 }
 0x114   : > { %1881 = dma.done.wait (%p2612_p0), %s616_s22, 128  }
 0x115   : > { %1883 = vsyncadd (%p2612_p0), %s616_s22, 4294967168  ;;  %s628_s14 = scalar_lea.vmem [#allocation12], %s2342_s5  ;;  %s634_s28 = scalar_lea.sflag [#allocation14], %s570_s16 }
 0x116   : > { %s637_s15 = scalar_lea.vmem [#allocation13], %s2342_s5 }
 0x117   : > { %1885 = dma.done.wait (%p2612_p0), %s634_s28, 64  }
 0x118   : > { %1887 = vsyncadd (%p2612_p0), %s634_s28, 4294967232  ;;  %s2614_s19 = sld [smem:[#allocation23_spill]]  ;;  %s2615_s21 = sld [smem:[#allocation22_spill]]  ;;  %v1431_v0 = vld [vmem:[%s2334_s9] sm:$0xff]   ;;  %v1442_v1 = vld [vmem:[%s2334_s9 + $0x8] sm:$0xff]   ;;  %vm849_vm1 = vcmask 261120  }
 0x119   : > { %v2376_v2 = vunpack.c.l.bf16 %v1431_v0  ;;  %v1436_v3 = vunpack.c.l.bf16 %v1442_v1  ;;  %v1437_v4 = vunpack.c.h.bf16 %v1442_v1  ;;  %v2380_v5 = vunpack.c.h.bf16 %v1431_v0  ;;  %v781_v6 = vld [vmem:[%s610_s27] sm:$0xf]  ;;  %v783_v7 = vld [vmem:[%s619_s23] sm:$0xf]  ;;  %s2616_s26 = sld [smem:[#allocation34_spill]]  ;;  %s2630_s22 = sld [smem:[#allocation33_spill]] }
 0x11a   : > { %v779_v9 = vld [vmem:[%s601_s1] sm:$0xf]  ;;  %v782_v11 = vunpack.c.l.bf16 %v781_v6  ;;  %v784_v13 = vunpack.c.l.bf16 %v783_v7  ;;  %v775_v20 = vld [vmem:[%s583_s13] sm:$0xf]  ;;  %v777_v27 = vld [vmem:[%s592_s30] sm:$0xf] }
 0x11b   : > { %v795_v8 = vmul.f32 %v1436_v3, %v1436_v3  ;;  %v796_v10 = vmul.f32 %v1437_v4, %v1437_v4  ;;  %v803_v12 = vand.u32 2147483647, %v2376_v2  ;;  %v825_v15 = vand.u32 2147483647, %v2380_v5  ;;  %v785_v31 = vld [vmem:[%s628_s14] sm:$0xf] }
 0x11c   : > { %v780_v16 = vunpack.c.l.bf16 %v779_v9  ;;  %v852_v22 = vadd.f32 0.01, %v782_v11  ;;  %v862_v24 = vadd.f32 0.01, %v784_v13  ;;  %v872_v25 = vadd.f32 %v784_v13, %v782_v11  ;;  %v1443_v32 = vld [vmem:[%s2334_s9 + $0x10] sm:$0xff]   ;;  %s2619_s9 = sld [smem:[#allocation21_spill]] }
 0x11d   : > { %v797_v14 = vadd.f32 %v796_v10, %v795_v8  ;;  %v804_v17 = vsub.f32 0.0, %v803_v12  ;;  %v826_v19 = vsub.f32 0.0, %v825_v15  ;;  %v2393_v26 = vunpack.c.l.bf16 %v775_v20  ;;  %v787_v35 = vld [vmem:[%s637_s15] sm:$0xf] }
 0x11e   : > { %p739_p7 = scmp.lt.s32.totalorder %s2614_s19, 1  ;;  %p751_p6 = scmp.lt.s32.totalorder %s2615_s21, 1  ;;  %vm789_vm0 = vcmp.gt.f32.partialorder %v780_v16, 0.0  ;;  %v2398_v29 = vunpack.c.l.bf16 %v777_v27  ;;  %v873_v30 = vadd.f32 1.0, %v872_v25  ;;  %v786_v36 = vunpack.c.l.bf16 %v785_v31 }
 0x11f   : > { %v798_v18 = vadd.f32 1e-08, %v797_v14  ;;  %v805_v21 = vmul.f32 1.442695, %v804_v17  ;;  %v827_v23 = vmul.f32 1.442695, %v826_v19  ;;  %v1440_v38 = vunpack.c.l.bf16 %v1443_v32 }
 0x120   : > { %s2654_s19 = smov (!%p739_p7, %s2614_s19), 1  ;;  %v790_v28 = vsel %vm789_vm0, %v2393_v26, 0.0  ;;  %v793_v34 = vsel %vm789_vm0, %v2398_v29, 0.0  ;;  %v1441_v39 = vunpack.c.h.bf16 %v1443_v32  ;;  %v788_v42 = vunpack.c.l.bf16 %v787_v35  ;;  %s1409_s5 = sshll.u32 %s2615_s21, 1 }
 0x121   : > { %s1410_s12 = sshll.u32 %s2654_s19, 2  ;;  %1572 = vrsqrt.f32 %v798_v18  ;;  %v2403_v33 = vmul.f32 %v790_v28, %v780_v16  ;;  %v2408_v40 = vmul.f32 %v793_v34, %v780_v16  ;;  %v802_v45 = vmax.f32 %v2376_v2, 0.0 }
 0x122   : > { %s752_s20 = scalar_select %p751_p6, %s2615_s21, 1  ;;  %1574 = vpow2.f32 %v805_v21  ;;  %v820_v49 = vsub.f32 1.0, %v2393_v26  ;;  %v824_v50 = vmax.f32 %v2380_v5, 0.0  ;;  %vm975_vm11 = vcmask 1040384  }
 0x123   : > { %1576 = vpow2.f32 %v827_v23  ;;  %v2411_v43 = vsub.f32 %v780_v16, %v2403_v33  ;;  %vm885_vm2 = vcmp.gt.f32.partialorder %v2408_v40, 0.0  ;;  %v906_v58 = vsel %vm849_vm1, %v2403_v33, 0.0  ;;  %s2437_s13 = sadd.s32 %s2619_s9, %s1409_s5  ;;  %p1426_p5 = scmp.ne.s32.totalorder %s2619_s9, 0 }
 0x124   : > { %s1412_s16 = sshll.u32 %s752_s20, 1  ;;  %1578 = vrcp.f32 %v852_v22  ;;  %p741_p13 = scmp.lt.s32.totalorder %s2437_s13, 3  ;;  %vm878_vm9 = vcmp.gt.f32.partialorder %v2403_v33, 0.0  ;;  %vm977_vm12 = vcmask 1041408   ;;  %vm979_vm13 = vcmask 1042432  }
 0x125   : > { %s755_s29 = sadd.s32 %s1412_s16, %s1410_s12  ;;  %1580 = vrcp.f32 %v862_v24  ;;  %v913_v61 = vsel %vm849_vm1, %v2411_v43, 0.0  ;;  %vm846_vm10 = vcmp.gt.f32.partialorder %v2411_v43, 0.0  ;;  %vm981_vm14 = vcmask 1043456  }
 0x126   : > { %s1414_s25 = sshll.u32 %s755_s29, 3  ;;  %1582 = vlog2.f32 %v873_v30  ;;  %s2656_s13 = smov (!%p741_p13, %s2437_s13), 3  ;;  %vm983_vm15 = vcmask 1044480   ;;  %vm985_vm0 = vcmask 1045504  }
 0x127   : > { %s2385_s8 = scalar_lea.vmem %s2616_s26, %s1414_s25  ;;  %s744_s30 = sadd.s32 %s1410_s12, %s2656_s13 }
 0x128   : > { %s1411_s24 = sshll.u32 %s744_s30, 3 }
 0x129   : > { %s746_s23 = scalar_lea.vmem %s2630_s22, %s1411_s24 }
 0x12b   : > { %v1573_v37 = vpop.eup %1572 }
 0x12c   : > { %v1575_v41 = vpop.eup %1574  ;;  %v800_v44 = vmul.f32 %v1573_v37, %v1436_v3  ;;  %v801_v52 = vmul.f32 %v1573_v37, %v1437_v4 }
 0x12d   : > { %v1577_v46 = vpop.eup %1576  ;;  %v807_v47 = vadd.f32 1.0, %v1575_v41  ;;  %v810_v48 = vmul.f32 -0.5, %v1575_v41  ;;  %v813_v59 = vand.u32 2147483647, %v1575_v41 }
 0x12e   : > { %v1579_v51 = vpop.eup %1578  ;;  %v829_v53 = vadd.f32 1.0, %v1577_v46  ;;  %v832_v54 = vmul.f32 -0.5, %v1577_v46  ;;  %v888_v55 = vsub.f32 %v800_v44, %v786_v36  ;;  %v835_v63 = vand.u32 2147483647, %v1577_v46 }
 0x12f   : > { %v1581_v56 = vpop.eup %1580  ;;  %1584 = vlog2.f32 %v807_v47  ;;  %v854_v57 = vmul.f32 %v1579_v51, %v1440_v38  ;;  %v811_v62 = vadd.f32 1.0, %v810_v48  ;;  %v897_v7 = vsub.f32 %v801_v52, %v788_v42 }
 0x130   : > { %1586 = vlog2.f32 %v829_v53  ;;  %v864_v60 = vmul.f32 %v1581_v56, %v1441_v39  ;;  %v889_v1 = vand.u32 2147483647, %v888_v55  ;;  %v833_v3 = vadd.f32 1.0, %v832_v54  ;;  %v1583_v12 = vpop.eup %1582 }
 0x131   : > { %v1420_v0 = vadd.f32 -1.0, %v854_v57  ;;  %v891_v6 = vmul.f32 0.5, %v888_v55  ;;  %v898_v16 = vand.u32 2147483647, %v897_v7  ;;  %v900_v20 = vmul.f32 0.5, %v897_v7 }
 0x132   : > { %v1422_v4 = vadd.f32 -1.0, %v864_v60  ;;  %vm2421_vm3 = vcmp.lt.f32.partialorder %v889_v1, 1.0  ;;  %v1424_v11 = vadd.f32 -0.5, %v889_v1  ;;  %v875_v27 = vmul.f32 0.6931472, %v1583_v12 }
 0x133   : > { %v856_v8 = vand.u32 2147483647, %v1420_v0  ;;  %v858_v9 = vmul.f32 0.5, %v1420_v0  ;;  %v892_v15 = vmul.f32 %v891_v6, %v888_v55  ;;  %vm2441_vm6 = vcmp.lt.f32.partialorder %v898_v16, 1.0 }
 0x134   : > { %v866_v13 = vand.u32 2147483647, %v1422_v4  ;;  %v868_v14 = vmul.f32 0.5, %v1422_v4  ;;  %v901_v30 = vmul.f32 %v900_v20, %v897_v7  ;;  %v812_v31 = vmul.f32 %v1575_v41, %v811_v62 }
 0x135   : > { %vm2426_vm4 = vcmp.lt.f32.partialorder %v856_v8, 1.0  ;;  %v859_v18 = vmul.f32 %v1420_v0, %v858_v9  ;;  %v1421_v19 = vadd.f32 -0.5, %v856_v8  ;;  %v894_v24 = vsel %vm2421_vm3, %v892_v15, %v1424_v11 }
 0x136   : > { %vm2430_vm5 = vcmp.lt.f32.partialorder %v866_v13, 1.0  ;;  %v869_v22 = vmul.f32 %v1422_v4, %v868_v14  ;;  %v1423_v23 = vadd.f32 -0.5, %v866_v13  ;;  %v895_v34 = vsel %vm885_vm2, %v894_v24, 0.0 }
 0x137   : > { %v861_v25 = vsel %vm2426_vm4, %v859_v18, %v1421_v19  ;;  %v1425_v35 = vadd.f32 -0.5, %v898_v16  ;;  %vm2449_vm7 = vcmp.lt.f32.partialorder %v813_v59, 0.0004427343  ;;  %v834_v38 = vmul.f32 %v1577_v46, %v833_v3 }
 0x138   : > { %v871_v32 = vsel %vm2430_vm5, %v869_v22, %v1423_v23  ;;  %v907_v42 = vrot.slane %v906_v58, 4  ;;  %vm2454_vm8 = vcmp.lt.f32.partialorder %v835_v63, 0.0004427343  ;;  %v914_v51 = vrot.slane %v913_v61, 4 }
 0x139   : > { %v1585_v36 = vpop.eup %1584  ;;  %v876_v39 = vadd.f32 %v871_v32, %v861_v25  ;;  %v903_v48 = vsel %vm2441_vm6, %v901_v30, %v1425_v35  ;;  %v896_v54 = vmul.f32 %v895_v34, %v2408_v40  ;;  %v842_v56 = vsub.f32 1.0, %v2398_v29 }
 0x13a   : > { %v1587_v44 = vpop.eup %1586  ;;  %v809_v47 = vmul.f32 0.6931472, %v1585_v36  ;;  %v904_v46 = vsel %vm885_vm2, %v903_v48, 0.0  ;;  %v941_v59 = vsel %vm849_vm1, %v2408_v40, 0.0  ;;  %v908_v0 = vadd.f32 %v907_v42, %v906_v58 }
 0x13b   : > { %v831_v52 = vmul.f32 0.6931472, %v1587_v44  ;;  %v877_v53 = vmul.f32 %v876_v39, %v875_v27  ;;  %v905_v57 = vmul.f32 %v904_v46, %v2408_v40  ;;  %v915_v4 = vadd.f32 %v914_v51, %v913_v61 }
 0x13c   : > { %v815_v55 = vsel %vm2449_vm7, %v812_v31, %v809_v47  ;;  %v955_v8 = vsel %vm849_vm1, %v896_v54, 0.0  ;;  %v909_v13 = vrot.slane %v908_v0, 2  ;;  %vm995_vm3 = vcmask (!%p1426_p5), 254976  }
 0x13d   : > { %v816_v60 = vadd.f32 %v815_v55, %v802_v45  ;;  %v837_v62 = vsel %vm2454_vm8, %v834_v38, %v831_v52  ;;  %v886_v63 = vsel %vm885_vm2, %v877_v53, 0.0  ;;  %v962_v6 = vsel %vm849_vm1, %v905_v57, 0.0 }
 0x13e   : > { %v838_v1 = vadd.f32 %v837_v62, %v824_v50  ;;  %v887_v3 = vmul.f32 %v886_v63, %v2408_v40  ;;  %v963_v9 = vrot.slane %v962_v6, 4  ;;  %v942_v40 = vrot.slane %v941_v59, 4 }
 0x13f   : > { %v817_v45 = vsub.f32 %v816_v60, %v2376_v2  ;;  %v821_v7 = vmin.f32 %v816_v60, 100.0  ;;  %v916_v2 = vrot.slane %v915_v4, 2  ;;  %v956_v15 = vrot.slane %v955_v8, 4 }
 0x140   : > { %v839_v10 = vsub.f32 %v838_v1, %v2380_v5  ;;  %v843_v58 = vmin.f32 %v838_v1, 100.0  ;;  %v948_v11 = vsel %vm849_vm1, %v887_v3, 0.0  ;;  %v964_v18 = vadd.f32 %v963_v9, %v962_v6 }
 0x141   : > { %v818_v12 = vmin.f32 %v817_v45, 100.0  ;;  %v822_v50 = vmul.f32 %v821_v7, %v820_v49  ;;  %v949_v17 = vrot.slane %v948_v11, 4  ;;  %v910_v49 = vadd.f32 %v909_v13, %v908_v0 }
 0x142   : > { %v840_v61 = vmin.f32 %v839_v10, 100.0  ;;  %v844_v14 = vmul.f32 %v843_v58, %v842_v56  ;;  %v943_v20 = vadd.f32 %v942_v40, %v941_v59  ;;  %v917_v22 = vadd.f32 %v916_v2, %v915_v4 }
 0x143   : > { %v819_v16 = vmul.f32 %v818_v12, %v2393_v26  ;;  %v957_v23 = vadd.f32 %v956_v15, %v955_v8  ;;  %v950_v26 = vadd.f32 %v949_v17, %v948_v11  ;;  %v965_v27 = vrot.slane %v964_v18, 2 }
 0x144   : > { %v841_v5 = vmul.f32 %v840_v61, %v2398_v29  ;;  %v911_v35 = vrot.slane %v910_v49, 1  ;;  %v944_v36 = vrot.slane %v943_v20, 2  ;;  %v918_v38 = vrot.slane %v917_v22, 1 }
 0x145   : > { %v823_v19 = vadd.f32 %v822_v50, %v819_v16  ;;  %v958_v42 = vrot.slane %v957_v23, 2  ;;  %v951_v48 = vrot.slane %v950_v26, 2  ;;  %vm987_vm2 = vcmask 1046528  }
 0x146   : > { %v845_v21 = vadd.f32 %v844_v14, %v841_v5  ;;  %v945_v54 = vadd.f32 %v944_v36, %v943_v20  ;;  %v912_v46 = vadd.f32 %v911_v35, %v910_v49  ;;  %v919_v59 = vadd.f32 %v918_v38, %v917_v22 }
 0x147   : > { %v847_v24 = vsel %vm846_vm10, %v823_v19, 0.0  ;;  %v879_v25 = vsel %vm878_vm9, %v823_v19, 0.0  ;;  %v952_v62 = vadd.f32 %v951_v48, %v950_v26  ;;  %v959_v63 = vadd.f32 %v958_v42, %v957_v23 }
 0x148   : > { %v848_v29 = vmul.f32 %v847_v24, %v2411_v43  ;;  %v880_v28 = vmul.f32 %v879_v25, %v2403_v33  ;;  %v881_v30 = vsel %vm878_vm9, %v845_v21, 0.0  ;;  %v883_v31 = vsel %vm846_vm10, %v845_v21, 0.0 }
 0x149   : > { %v882_v32 = vmul.f32 %v881_v30, %v2403_v33  ;;  %v884_v34 = vmul.f32 %v883_v31, %v2411_v43  ;;  %v966_v33 = vadd.f32 %v965_v27, %v964_v18  ;;  %v946_v8 = vrot.slane %v945_v54, 1 }
 0x14a   : > { %v850_v37 = vsel %vm849_vm1, %v848_v29, 0.0  ;;  %v920_v39 = vsel %vm849_vm1, %v880_v28, 0.0  ;;  %v953_v58 = vrot.slane %v952_v62, 1  ;;  %v960_v11 = vrot.slane %v959_v63, 1 }
 0x14b   : > { %851 = vst [vmem:[%s746_s23] sm:$0xff] %v850_v37  ;;  %v921_v44 = vrot.slane %v920_v39, 4  ;;  %v927_v47 = vsel %vm849_vm1, %v882_v32, 0.0  ;;  %v934_v41 = vsel %vm849_vm1, %v884_v34, 0.0  ;;  %v969_v53 = vrot.slane %v850_v37, 4 }
 0x14c   : > { %v928_v51 = vrot.slane %v927_v47, 4  ;;  %v935_v52 = vrot.slane %v934_v41, 4  ;;  %v967_v3 = vrot.slane %v966_v33, 1  ;;  %v976_v12 = vsel %vm975_vm11, %v912_v46, %v919_v59 }
 0x14d   : > { %v922_v43 = vadd.f32 %v921_v44, %v920_v39  ;;  %v970_v57 = vadd.f32 %v969_v53, %v850_v37  ;;  %v947_v16 = vadd.f32 %v946_v8, %v945_v54  ;;  %v954_v18 = vadd.f32 %v953_v58, %v952_v62 }
 0x14e   : > { %v929_v55 = vadd.f32 %v928_v51, %v927_v47  ;;  %v936_v56 = vadd.f32 %v935_v52, %v934_v41  ;;  %v968_v40 = vadd.f32 %v967_v3, %v966_v33  ;;  %v961_v19 = vadd.f32 %v960_v11, %v959_v63 }
 0x14f   : > { %v923_v60 = vrot.slane %v922_v43, 2  ;;  %v971_v4 = vrot.slane %v970_v57, 2 }
 0x150   : > { %v930_v0 = vrot.slane %v929_v55, 2  ;;  %v937_v1 = vrot.slane %v936_v56, 2 }
 0x151   : > { %v924_v6 = vadd.f32 %v923_v60, %v922_v43  ;;  %v972_v9 = vadd.f32 %v971_v4, %v970_v57 }
 0x152   : > { %v931_v45 = vadd.f32 %v930_v0, %v929_v55  ;;  %v938_v7 = vadd.f32 %v937_v1, %v936_v56 }
 0x153   : > { %v925_v10 = vrot.slane %v924_v6, 1  ;;  %v973_v61 = vrot.slane %v972_v9, 1 }
 0x154   : > { %v932_v50 = vrot.slane %v931_v45, 1  ;;  %v939_v13 = vrot.slane %v938_v7, 1 }
 0x155   : > { %v926_v14 = vadd.f32 %v925_v10, %v924_v6  ;;  %v974_v17 = vadd.f32 %v973_v61, %v972_v9 }
 0x156   : > { %v933_v2 = vadd.f32 %v932_v50, %v931_v45  ;;  %v940_v15 = vadd.f32 %v939_v13, %v938_v7  ;;  %993 = sbr.rel (%p1426_p5) target bundleno = 350 (0x15e), region = 88 }
 0x157   : > { %v978_v5 = vsel %vm977_vm12, %v976_v12, %v926_v14  ;;  %v989_v20 = vsel %vm975_vm11, %v968_v40, %v974_v17 }
 0x158   : > { %v980_v49 = vsel %vm979_vm13, %v978_v5, %v933_v2  ;;  %996 = vst.msk [vmem:[%s2385_s8 + $0x8] sm:$0x3] (!%p1426_p5), %vm995_vm3, %v989_v20 }
 0x159   : > { %v982_v21 = vsel %vm981_vm14, %v980_v49, %v940_v15 }
 0x15a   : > { %v984_v22 = vsel %vm983_vm15, %v982_v21, %v947_v16 }
 0x15b   : > { %v986_v23 = vsel %vm985_vm0, %v984_v22, %v954_v18 }
 0x15c   : > { %v988_v24 = vsel %vm987_vm2, %v986_v23, %v961_v19 }
 0x15d   : > { %994 = vst.msk [vmem:[%s2385_s8] sm:$0xff] %vm849_vm1, %v988_v24 }
 0x15e PF: > { %s2631_s14 = sld [smem:[#allocation21_spill]] }
 0x164   : > { %p1427_p1 = scmp.eq.s32.totalorder %s2631_s14, 0 }
 0x165   : > { %v1001_v25 = vld [vmem:[%s2385_s8] sm:$0xff] (!%p1427_p1)  ;;  %v1002_v26 = vld [vmem:[%s2385_s8 + $0x8] sm:$0x3] (!%p1427_p1)  ;;  %vm1006_vm4 = vcmask (!%p1427_p1), 254976  }
 0x166   : > { %1000 = sbr.rel (%p1427_p1) target bundleno = 365 (0x16d), region = 92  ;;  %v1003_v27 = vadd.f32 (!%p1427_p1), %v1001_v25, %v988_v24  ;;  %v1004_v29 = vadd.f32 (!%p1427_p1), %v1002_v26, %v989_v20 }
 0x168   : > { %1005 = vst.msk [vmem:[%s2385_s8] sm:$0xff] (!%p1427_p1), %vm849_vm1, %v1003_v27 }
 0x169   : > { %1007 = vst.msk [vmem:[%s2385_s8 + $0x8] sm:$0x3] (!%p1427_p1), %vm1006_vm4, %v1004_v29 }
 0x16d PF: > { %s35_s18 = sadd.s32 1, %s1926_s18   ;;  %s2632_s28 = sld [smem:[#allocation20_spill]] }
 0x16e   : > { %p32_p11 = scmp.ge.s32.totalorder %s35_s18, 10   ;;  %s2633_s11 = sld [smem:[#allocation29_spill]] }
 0x16f   : > { %s2634_s12 = sld [smem:[#allocation24_spill]]  ;;  %s2635_s13 = sld [smem:[#allocation25_spill]] }
 0x170   : > { %s2636_s15 = sld [smem:[#allocation26_spill]]  ;;  %s2637_s16 = sld [smem:[#allocation27_spill]] }
 0x171   : > { %s2638_s19 = sld [smem:[#allocation28_spill]]  ;;  %s2639_s30 = smov %s1894_s10 }
 0x172   : > { %s2641_s14 = smov %s1922_s17  ;;  %34 = sbr.rel (!%p32_p11) target bundleno = 20 (0x14), region = 202 }
 0x173   : > { %s2640_s10 = smov %s2632_s28 }
 0x177   : > { %s2642_s17 = smov %s2638_s19 }
 0x179   :  { %1065 = vsyncpa [#allocation3], 1 }
 0x17a   :  { %1067 = vsyncpa [#allocation3 + $0x1], 1 }
 0x17b   :  { %1068 = vsyncpa [#allocation5], 1 }
 0x17c   :  { %1070 = vsyncpa [#allocation5 + $0x1], 1 }
 0x17d   :  { %1071 = vsyncpa [#allocation8], 1 }
 0x17e   :  { %1073 = vsyncpa [#allocation8 + $0x1], 1 }
 0x17f   :  { %1074 = vsyncpa [#allocation11], 1 }
 0x180   :  { %1076 = vsyncpa [#allocation11 + $0x1], 1 }
 0x181   :  { %1077 = vsyncpa [#allocation14], 1 }
 0x182   :  { %1079 = vsyncpa [#allocation14 + $0x1], 1 }

</bundles_post_ra>
